<compile_context>
chip_gen: v7x
topology: tpu7x:2x2x1
jax: 0.10.0
libtpu: 0.0.40
codegen_flags: <defaults>
</compile_context>

<pallas_src>
import math

import jax
import jax.numpy as jnp
from jax.experimental import pallas as pl
from jax.experimental.pallas import tpu as pltpu


LANE = 128                 # pad narrow channel dims to this (lane-dense operands)
MXU_DTYPE = jnp.bfloat16   # matmul operand dtype (f32 accumulate + f32 epilogue)

K1, K2, K3 = 49, 7, 7      # conv1 filter sizes of the three CNNBlocks
STRIDE = 2                 # conv1 / convt stride in every block
POOL1, POOL2 = 2, 4        # MaxPool1d sizes after blocks 1 and 2
LPAD = 8                   # sublane-aligned left halo of the VMEM activation bufs


# ----------------------------------------------------------------------------
# Fused FE kernel (one batch element per grid step)
# ----------------------------------------------------------------------------
def _make_fe_kernel(P1, P2, LO3):
    """P1: pooled length after block 1, P2: after block 2, LO3: final length."""
    f32 = jnp.float32
    pad2, pad3 = K2 // 2, K3 // 2

    def trunk(x, w1, b1, w2, b2, w3, b3):
        # conv1(+BN1+ReLU) -> conv2 1x1(+BN2+ReLU) -> conv3 1x1(+BN3)
        h = jnp.dot(x.astype(MXU_DTYPE), w1[...], preferred_element_type=f32)
        h = jnp.maximum(h + b1[...], 0.0)
        h = jnp.dot(h.astype(MXU_DTYPE), w2[...], preferred_element_type=f32)
        h = jnp.maximum(h + b2[...], 0.0)
        return jnp.dot(h.astype(MXU_DTYPE), w3[...], preferred_element_type=f32) + b3[...]

    def kernel(xi_ref,
               w11, b11, w21, b21, w31, b31, wt1, bt1,
               w12, b12, w22, b22, w32, b32, wt2, bt2,
               w13, b13, w23, b23, w33, b33, wt3, bt3,
               o_ref, a1, a2):
        # ---- block 1: conv1 as one MXU matmul over the HBM-side im2col -------
        # xi rows are in pool-phase order [even conv rows | odd conv rows];
        # column 0 is the center tap (== the stride-2 shortcut input).
        xi = xi_ref[...]                                        # (2*P1, 128) bf16
        h3 = trunk(xi, w11, b11, w21, b21, w31, b31)
        sc = xi[:, 0:1].astype(f32) * wt1[...]                  # convt (Cin == 1)
        y = jnp.maximum(h3 + sc + bt1[...], 0.0)
        pooled = jnp.maximum(y[:P1], y[P1:])                    # fused MaxPool1d(2,2)
        # write into the zero-haloed VMEM activation buffer consumed by block 2
        a1[pl.ds(0, LPAD), :] = jnp.zeros((LPAD, LANE), f32)
        a1[pl.ds(LPAD + P1, pad2), :] = jnp.zeros((pad2, LANE), f32)
        a1[pl.ds(LPAD, P1), :] = pooled

        # ---- block 2: 7 taps merged into one 896-deep matmul, pool-phase rows -
        phases = []
        for ph in range(POOL2):
            taps = [a1[pl.ds(LPAD - pad2 + STRIDE * ph + t, P2,
                             stride=STRIDE * POOL2), :] for t in range(K2)]
            phases.append(jnp.concatenate(taps, axis=-1))       # (P2, 7*128)
        x2 = jnp.concatenate(phases, axis=0)                    # (4*P2, 7*128)
        h3 = trunk(x2, w12, b12, w22, b22, w32, b32)
        sc = jnp.dot(x2[:, pad2 * LANE:(pad2 + 1) * LANE].astype(MXU_DTYPE),
                     wt2[...], preferred_element_type=f32)      # convt (stride 2)
        y = jnp.maximum(h3 + sc + bt2[...], 0.0)
        pooled = y[:P2]                                         # fused MaxPool1d(4,4)
        for ph in range(1, POOL2):
            pooled = jnp.maximum(pooled, y[ph * P2:(ph + 1) * P2])
        a2[pl.ds(0, LPAD), :] = jnp.zeros((LPAD, LANE), f32)
        a2[pl.ds(LPAD + P2, pad3), :] = jnp.zeros((pad3, LANE), f32)
        a2[pl.ds(LPAD, P2), :] = pooled

        # ---- block 3: merged 7-tap conv, no pooling ---------------------------
        taps = [a2[pl.ds(LPAD - pad3 + t, LO3, stride=STRIDE), :] for t in range(K3)]
        x3 = jnp.concatenate(taps, axis=-1)                     # (LO3, 7*128)
        h3 = trunk(x3, w13, b13, w23, b23, w33, b33)
        sc = jnp.dot(x3[:, pad3 * LANE:(pad3 + 1) * LANE].astype(MXU_DTYPE),
                     wt3[...], preferred_element_type=f32)
        o_ref[...] = jnp.maximum(h3 + sc + bt3[...], 0.0).astype(o_ref.dtype)

    return kernel


# ----------------------------------------------------------------------------
# FE forward wrapper
# ----------------------------------------------------------------------------
def fe_forward(x, params):
    """FE.forward.  x: (N, 1, L) NCL -> (N, 128, L_out) NCL."""
    n, c, length = x.shape
    assert c == 1
    pad1 = K1 // 2

    lo1 = (length + 2 * pad1 - K1) // STRIDE + 1       # block-1 conv output length
    p1 = lo1 // POOL1                                  # after MaxPool1d(2, 2)
    lo2 = (p1 + 2 * (K2 // 2) - K2) // STRIDE + 1      # block-2 conv output length
    p2 = lo2 // POOL2                                  # after MaxPool1d(4, 4)
    lo3 = (p2 + 2 * (K3 // 2) - K3) // STRIDE + 1      # block-3 output length
    assert p1 >= 1 and p2 >= 1 and lo3 >= 1, "input too short for FE"

    # Block-1 im2col (Cin == 1 -> negligible HBM cost), bf16, 128-lane dense:
    #   rows    : conv output rows in max-pool phase order (evens then odds)
    #   columns : the 49 taps with the center tap (== shortcut input) first
    xp = jnp.pad(x[:, 0, :], ((0, 0), (pad1, pad1)))                 # (N, L + 48)
    conv_rows = jnp.concatenate(
        [jnp.arange(p1) * POOL1 + ph for ph in range(POOL1)])        # (2*p1,)
    col_order = jnp.array([pad1] + [kk for kk in range(K1) if kk != pad1])
    idx = conv_rows[:, None] * STRIDE + col_order[None, :]           # (2*p1, 49)
    xi = jnp.take(xp, idx, axis=1)                                   # (N, 2*p1, 49)
    xi = jnp.pad(xi, ((0, 0), (0, 0), (0, LANE - K1))).astype(MXU_DTYPE)

    weight_names = ("w1", "b1", "w2", "b2", "w3", "b3", "wt", "bt")
    weights = [params[blk][k] for blk in ("b1", "b2", "b3") for k in weight_names]

    def _resident(a):
        nd = a.ndim
        return pl.BlockSpec(a.shape, lambda *_: (0,) * nd)

    in_specs = [pl.BlockSpec((None, 2 * p1, LANE), lambda b: (b, 0, 0))]
    in_specs += [_resident(a) for a in weights]

    out = pl.pallas_call(
        _make_fe_kernel(p1, p2, lo3),
        out_shape=jax.ShapeDtypeStruct((n, lo3, LANE), jnp.float32),
        grid=(n,),
        in_specs=in_specs,
        out_specs=pl.BlockSpec((None, lo3, LANE), lambda b: (b, 0, 0)),
        scratch_shapes=[pltpu.VMEM((LPAD + p1 + K2 // 2, LANE), jnp.float32),
                        pltpu.VMEM((LPAD + p2 + K3 // 2, LANE), jnp.float32)],
        compiler_params=pltpu.CompilerParams(
            dimension_semantics=("parallel",)),
    )(xi, *weights)

    # dropout -> identity (eval mode)
    # Tiny (N, lo3, 128) -> NCL transpose kept outside the kernel: in-kernel
    # stores stay 128-lane dense; the transposed block would be lane-sparse.
    return jnp.transpose(out, (0, 2, 1))


# ----------------------------------------------------------------------------
# Deterministic parameter init (PyTorch layout) + kernel-form preparation
# ----------------------------------------------------------------------------
def _init_bn(key, ch, eps=1e-5):
    k1, k2, k3, k4 = jax.random.split(key, 4)
    gamma = 1.0 + 0.1 * jax.random.normal(k1, (ch,), jnp.float32)
    beta = 0.1 * jax.random.normal(k2, (ch,), jnp.float32)
    mean = 0.1 * jax.random.normal(k3, (ch,), jnp.float32)
    var = 1.0 + 0.1 * jax.random.uniform(k4, (ch,), jnp.float32)
    scale = gamma * jax.lax.rsqrt(var + eps)
    shift = beta - mean * scale
    return scale, shift


def _init_block_raw(key, in_ch, out_ch, ksize):
    ks = jax.random.split(key, 8)

    def conv_w(k, co, ci, kw):
        std = 1.0 / math.sqrt(ci * kw)
        return std * jax.random.normal(k, (co, ci, kw), jnp.float32)

    return dict(
        conv1=conv_w(ks[0], out_ch, in_ch, ksize),
        conv2=conv_w(ks[1], out_ch * 2, out_ch, 1),
        conv3=conv_w(ks[2], out_ch, out_ch * 2, 1),
        convt=conv_w(ks[3], out_ch, in_ch, 1),
        bn1=_init_bn(ks[4], out_ch),
        bn2=_init_bn(ks[5], out_ch * 2),
        bn3=_init_bn(ks[6], out_ch),
        bnt=_init_bn(ks[7], out_ch),
    )


def init_fe_raw(key):
    k1, k2, k3 = jax.random.split(key, 3)
    return dict(
        b1=_init_block_raw(k1, 1, 64, K1),
        b2=_init_block_raw(k2, 64, 128, K2),
        b3=_init_block_raw(k3, 128, 128, K3),
    )


def _prep_block(raw, *, first):
    """Fold BN (eval) into the conv weights + a bias and lay them out in
    channels-last matmul form, lane-padded to 128, for the fused kernel."""
    s1, sh1 = raw["bn1"]
    s2, sh2 = raw["bn2"]
    s3, sh3 = raw["bn3"]
    st, sht = raw["bnt"]
    conv1, conv2, conv3, convt = raw["conv1"], raw["conv2"], raw["conv3"], raw["convt"]
    co, ci, kk = conv1.shape
    co_eff = LANE                          # 64 -> 128 (zero rows/cols), 128 -> 128

    def padb(v):                           # (co,) -> (1, co_eff) f32
        return jnp.pad(v, (0, co_eff - v.shape[0])).reshape(1, -1).astype(jnp.float32)

    if first:
        assert ci == 1
        # conv1: (co, 1, K) -> (K, co) * BN1-scale, center tap first, pad (128, 128)
        w1 = conv1[:, 0, :].T * s1[None, :]
        order = [kk // 2] + [t for t in range(kk) if t != kk // 2]
        w1 = w1[jnp.array(order), :]
        w1 = jnp.pad(w1, ((0, LANE - kk), (0, co_eff - co)))
        # convt: (co, 1, 1) -> (1, co_eff) f32 (applied as a VPU broadcast)
        wt = padb(convt[:, 0, 0] * st)
    else:
        ci_eff = LANE
        # conv1: (co, ci, K) -> merged-tap (K*ci_eff, co_eff), BN1-scale folded
        w1 = jnp.transpose(conv1, (2, 1, 0)) * s1[None, None, :]       # (K, ci, co)
        w1 = jnp.pad(w1, ((0, 0), (0, ci_eff - ci), (0, co_eff - co)))
        w1 = w1.reshape(kk * ci_eff, co_eff)
        # convt: (co, ci, 1) -> (ci_eff, co_eff)
        wt = convt[:, :, 0].T * st[None, :]
        wt = jnp.pad(wt, ((0, ci_eff - ci), (0, co_eff - co))).astype(MXU_DTYPE)

    # conv2: (2co, co, 1) -> (co_eff, 2co);  conv3: (co, 2co, 1) -> (2co, co_eff)
    w2 = jnp.pad(conv2[:, :, 0].T * s2[None, :], ((0, co_eff - co), (0, 0)))
    w3 = jnp.pad(conv3[:, :, 0].T * s3[None, :], ((0, 0), (0, co_eff - co)))

    return dict(
        w1=w1.astype(MXU_DTYPE), b1=padb(sh1),
        w2=w2.astype(MXU_DTYPE), b2=sh2.reshape(1, -1).astype(jnp.float32),
        w3=w3.astype(MXU_DTYPE), b3=padb(sh3),
        wt=wt, bt=padb(sht))


def prepare_fe_params(raw):
    return dict(b1=_prep_block(raw["b1"], first=True),
                b2=_prep_block(raw["b2"], first=False),
                b3=_prep_block(raw["b3"], first=False))


# ----------------------------------------------------------------------------
# Pure-JAX float32 reference (correctness check only)
# ----------------------------------------------------------------------------
def _conv1d(x, w, stride, pad):
    return jax.lax.conv_general_dilated(
        x, w, window_strides=(stride,), padding=[(pad, pad)],
        dimension_numbers=("NCH", "OIH", "NCH"))


def _bn(x, p):
    scale, shift = p
    return x * scale[None, :, None] + shift[None, :, None]


def fe_reference(x, raw):
    def block(h, p, ksize):
        shortcut = _bn(_conv1d(h, p["convt"], STRIDE, 0), p["bnt"])
        h = jax.nn.relu(_bn(_conv1d(h, p["conv1"], STRIDE, ksize // 2), p["bn1"]))
        h = jax.nn.relu(_bn(_conv1d(h, p["conv2"], 1, 0), p["bn2"]))
        h = _bn(_conv1d(h, p["conv3"], 1, 0), p["bn3"])
        return jax.nn.relu(h + shortcut)

    def pool(h, k):
        n, c, l = h.shape
        return h.reshape(n, c, l // k, k).max(axis=-1)

    h = pool(block(x, raw["b1"], K1), POOL1)
    h = pool(block(h, raw["b2"], K2), POOL2)
    return block(h, raw["b3"], K3)


# ----------------------------------------------------------------------------
if __name__ == "__main__":
    key = jax.random.PRNGKey(0)
    k_params, k_x = jax.random.split(key)

    raw = init_fe_raw(k_params)
    params = prepare_fe_params(raw)

    # Small input consistent with FE: (batch=2, channels=1, length=256).
    x = jax.random.normal(k_x, (2, 1, 256), jnp.float32)

    out = jax.jit(fe_forward)(x, params)
    out = jax.block_until_ready(out)

    assert out.shape == (2, 128, 4), out.shape
    assert bool(jnp.all(jnp.isfinite(out)))
    assert bool(jnp.all(out >= 0.0))          # final op of CNNBlock is ReLU

    # Numerical check against a pure-JAX float32 reference (the kernel uses bf16
    # MXU operands throughout -> combined abs/rel tolerance).
    ref = jax.jit(fe_reference)(x, raw)
    err = float(jnp.max(jnp.abs(out - ref)))
    tol = 0.05 + 0.02 * float(jnp.max(jnp.abs(ref)))
    assert err < tol, f"max abs error vs reference: {err} (tol {tol})"

    print("KERNEL_OK")
</pallas_src>

<mosaic_0001>
module attributes {stable_mosaic.version = 11 : i64} {
  func.func @kernel(%arg0: i32, %arg1: memref<1x128x128xbf16, #tpu.memory_space<vmem>>, %arg2: memref<128x128xbf16, #tpu.memory_space<vmem>>, %arg3: memref<1x128xf32, #tpu.memory_space<vmem>>, %arg4: memref<128x128xbf16, #tpu.memory_space<vmem>>, %arg5: memref<1x128xf32, #tpu.memory_space<vmem>>, %arg6: memref<128x128xbf16, #tpu.memory_space<vmem>>, %arg7: memref<1x128xf32, #tpu.memory_space<vmem>>, %arg8: memref<1x128xf32, #tpu.memory_space<vmem>>, %arg9: memref<1x128xf32, #tpu.memory_space<vmem>>, %arg10: memref<896x128xbf16, #tpu.memory_space<vmem>>, %arg11: memref<1x128xf32, #tpu.memory_space<vmem>>, %arg12: memref<128x256xbf16, #tpu.memory_space<vmem>>, %arg13: memref<1x256xf32, #tpu.memory_space<vmem>>, %arg14: memref<256x128xbf16, #tpu.memory_space<vmem>>, %arg15: memref<1x128xf32, #tpu.memory_space<vmem>>, %arg16: memref<128x128xbf16, #tpu.memory_space<vmem>>, %arg17: memref<1x128xf32, #tpu.memory_space<vmem>>, %arg18: memref<896x128xbf16, #tpu.memory_space<vmem>>, %arg19: memref<1x128xf32, #tpu.memory_space<vmem>>, %arg20: memref<128x256xbf16, #tpu.memory_space<vmem>>, %arg21: memref<1x256xf32, #tpu.memory_space<vmem>>, %arg22: memref<256x128xbf16, #tpu.memory_space<vmem>>, %arg23: memref<1x128xf32, #tpu.memory_space<vmem>>, %arg24: memref<128x128xbf16, #tpu.memory_space<vmem>>, %arg25: memref<1x128xf32, #tpu.memory_space<vmem>>, %arg26: memref<1x4x128xf32, #tpu.memory_space<vmem>>, %arg27: memref<75x128xf32, #tpu.memory_space<vmem>>, %arg28: memref<19x128xf32, #tpu.memory_space<vmem>>) attributes {dimension_semantics = [#tpu.dimension_semantics<parallel>], iteration_bounds = array<i64: 2>, scalar_prefetch = 0 : i64, scratch_operands = 2 : i64, tpu.core_type = #tpu.core_type<tc>, window_params = [{transform_indices = @transform_0, window_bounds = array<i64: 1, 128, 128>}, {pipeline_mode = #tpu.pipeline_mode<synchronous>, transform_indices = @transform_1, window_bounds = array<i64: 128, 128>}, {pipeline_mode = #tpu.pipeline_mode<synchronous>, transform_indices = @transform_2, window_bounds = array<i64: 1, 128>}, {pipeline_mode = #tpu.pipeline_mode<synchronous>, transform_indices = @transform_3, window_bounds = array<i64: 128, 128>}, {pipeline_mode = #tpu.pipeline_mode<synchronous>, transform_indices = @transform_4, window_bounds = array<i64: 1, 128>}, {pipeline_mode = #tpu.pipeline_mode<synchronous>, transform_indices = @transform_5, window_bounds = array<i64: 128, 128>}, {pipeline_mode = #tpu.pipeline_mode<synchronous>, transform_indices = @transform_6, window_bounds = array<i64: 1, 128>}, {pipeline_mode = #tpu.pipeline_mode<synchronous>, transform_indices = @transform_7, window_bounds = array<i64: 1, 128>}, {pipeline_mode = #tpu.pipeline_mode<synchronous>, transform_indices = @transform_8, window_bounds = array<i64: 1, 128>}, {pipeline_mode = #tpu.pipeline_mode<synchronous>, transform_indices = @transform_9, window_bounds = array<i64: 896, 128>}, {pipeline_mode = #tpu.pipeline_mode<synchronous>, transform_indices = @transform_10, window_bounds = array<i64: 1, 128>}, {pipeline_mode = #tpu.pipeline_mode<synchronous>, transform_indices = @transform_11, window_bounds = array<i64: 128, 256>}, {pipeline_mode = #tpu.pipeline_mode<synchronous>, transform_indices = @transform_12, window_bounds = array<i64: 1, 256>}, {pipeline_mode = #tpu.pipeline_mode<synchronous>, transform_indices = @transform_13, window_bounds = array<i64: 256, 128>}, {pipeline_mode = #tpu.pipeline_mode<synchronous>, transform_indices = @transform_14, window_bounds = array<i64: 1, 128>}, {pipeline_mode = #tpu.pipeline_mode<synchronous>, transform_indices = @transform_15, window_bounds = array<i64: 128, 128>}, {pipeline_mode = #tpu.pipeline_mode<synchronous>, transform_indices = @transform_16, window_bounds = array<i64: 1, 128>}, {pipeline_mode = #tpu.pipeline_mode<synchronous>, transform_indices = @transform_17, window_bounds = array<i64: 896, 128>}, {pipeline_mode = #tpu.pipeline_mode<synchronous>, transform_indices = @transform_18, window_bounds = array<i64: 1, 128>}, {pipeline_mode = #tpu.pipeline_mode<synchronous>, transform_indices = @transform_19, window_bounds = array<i64: 128, 256>}, {pipeline_mode = #tpu.pipeline_mode<synchronous>, transform_indices = @transform_20, window_bounds = array<i64: 1, 256>}, {pipeline_mode = #tpu.pipeline_mode<synchronous>, transform_indices = @transform_21, window_bounds = array<i64: 256, 128>}, {pipeline_mode = #tpu.pipeline_mode<synchronous>, transform_indices = @transform_22, window_bounds = array<i64: 1, 128>}, {pipeline_mode = #tpu.pipeline_mode<synchronous>, transform_indices = @transform_23, window_bounds = array<i64: 128, 128>}, {pipeline_mode = #tpu.pipeline_mode<synchronous>, transform_indices = @transform_24, window_bounds = array<i64: 1, 128>}, {transform_indices = @transform_25, window_bounds = array<i64: 1, 4, 128>}]} {
    %c0 = arith.constant 0 : index
    %c0_0 = arith.constant 0 : index
    %c0_1 = arith.constant 0 : index
    %0 = vector.load %arg1[%c0, %c0_0, %c0_1] : memref<1x128x128xbf16, #tpu.memory_space<vmem>>, vector<1x128x128xbf16>
    %1 = vector.shape_cast %0 : vector<1x128x128xbf16> to vector<128x128xbf16>
    %c0_2 = arith.constant 0 : index
    %c0_3 = arith.constant 0 : index
    %2 = vector.load %arg2[%c0_2, %c0_3] : memref<128x128xbf16, #tpu.memory_space<vmem>>, vector<128x128xbf16>
    %cst = arith.constant dense<0.000000e+00> : vector<128x128xf32>
    %3 = tpu.matmul %1, %2, %cst {dimension_numbers = #tpu.dot_dimension_numbers<[1], [0], [0], [1], [0, 0, 1, 1], [], []>} : vector<128x128xbf16>, vector<128x128xbf16>, vector<128x128xf32> -> vector<128x128xf32>
    %c0_4 = arith.constant 0 : index
    %c0_5 = arith.constant 0 : index
    %4 = vector.load %arg3[%c0_4, %c0_5] : memref<1x128xf32, #tpu.memory_space<vmem>>, vector<1x128xf32>
    %5 = vector.broadcast %4 : vector<1x128xf32> to vector<128x128xf32>
    %6 = arith.addf %3, %5 : vector<128x128xf32>
    %cst_6 = arith.constant 0.000000e+00 : f32
    %7 = vector.broadcast %cst_6 : f32 to vector<128x128xf32>
    %8 = arith.maximumf %6, %7 : vector<128x128xf32>
    %9 = arith.truncf %8 : vector<128x128xf32> to vector<128x128xbf16>
    %c0_7 = arith.constant 0 : index
    %c0_8 = arith.constant 0 : index
    %10 = vector.load %arg4[%c0_7, %c0_8] : memref<128x128xbf16, #tpu.memory_space<vmem>>, vector<128x128xbf16>
    %cst_9 = arith.constant dense<0.000000e+00> : vector<128x128xf32>
    %11 = tpu.matmul %9, %10, %cst_9 {dimension_numbers = #tpu.dot_dimension_numbers<[1], [0], [0], [1], [0, 0, 1, 1], [], []>} : vector<128x128xbf16>, vector<128x128xbf16>, vector<128x128xf32> -> vector<128x128xf32>
    %c0_10 = arith.constant 0 : index
    %c0_11 = arith.constant 0 : index
    %12 = vector.load %arg5[%c0_10, %c0_11] : memref<1x128xf32, #tpu.memory_space<vmem>>, vector<1x128xf32>
    %13 = vector.broadcast %12 : vector<1x128xf32> to vector<128x128xf32>
    %14 = arith.addf %11, %13 : vector<128x128xf32>
    %cst_12 = arith.constant 0.000000e+00 : f32
    %15 = vector.broadcast %cst_12 : f32 to vector<128x128xf32>
    %16 = arith.maximumf %14, %15 : vector<128x128xf32>
    %17 = arith.truncf %16 : vector<128x128xf32> to vector<128x128xbf16>
    %c0_13 = arith.constant 0 : index
    %c0_14 = arith.constant 0 : index
    %18 = vector.load %arg6[%c0_13, %c0_14] : memref<128x128xbf16, #tpu.memory_space<vmem>>, vector<128x128xbf16>
    %cst_15 = arith.constant dense<0.000000e+00> : vector<128x128xf32>
    %19 = tpu.matmul %17, %18, %cst_15 {dimension_numbers = #tpu.dot_dimension_numbers<[1], [0], [0], [1], [0, 0, 1, 1], [], []>} : vector<128x128xbf16>, vector<128x128xbf16>, vector<128x128xf32> -> vector<128x128xf32>
    %c0_16 = arith.constant 0 : index
    %c0_17 = arith.constant 0 : index
    %20 = vector.load %arg7[%c0_16, %c0_17] : memref<1x128xf32, #tpu.memory_space<vmem>>, vector<1x128xf32>
    %21 = vector.broadcast %20 : vector<1x128xf32> to vector<128x128xf32>
    %22 = arith.addf %19, %21 : vector<128x128xf32>
    %23 = vector.extract_strided_slice %1 {offsets = [0, 0], sizes = [128, 1], strides = [1, 1]} : vector<128x128xbf16> to vector<128x1xbf16>
    %24 = arith.extf %23 : vector<128x1xbf16> to vector<128x1xf32>
    %c0_18 = arith.constant 0 : index
    %c0_19 = arith.constant 0 : index
    %25 = vector.load %arg8[%c0_18, %c0_19] : memref<1x128xf32, #tpu.memory_space<vmem>>, vector<1x128xf32>
    %26 = vector.broadcast %24 : vector<128x1xf32> to vector<128x128xf32>
    %27 = vector.broadcast %25 : vector<1x128xf32> to vector<128x128xf32>
    %28 = arith.mulf %26, %27 : vector<128x128xf32>
    %29 = arith.addf %22, %28 : vector<128x128xf32>
    %c0_20 = arith.constant 0 : index
    %c0_21 = arith.constant 0 : index
    %30 = vector.load %arg9[%c0_20, %c0_21] : memref<1x128xf32, #tpu.memory_space<vmem>>, vector<1x128xf32>
    %31 = vector.broadcast %30 : vector<1x128xf32> to vector<128x128xf32>
    %32 = arith.addf %29, %31 : vector<128x128xf32>
    %cst_22 = arith.constant 0.000000e+00 : f32
    %33 = vector.broadcast %cst_22 : f32 to vector<128x128xf32>
    %34 = arith.maximumf %32, %33 : vector<128x128xf32>
    %35 = vector.extract_strided_slice %34 {offsets = [0, 0], sizes = [64, 128], strides = [1, 1]} : vector<128x128xf32> to vector<64x128xf32>
    %36 = vector.extract_strided_slice %34 {offsets = [64, 0], sizes = [64, 128], strides = [1, 1]} : vector<128x128xf32> to vector<64x128xf32>
    %37 = arith.maximumf %35, %36 : vector<64x128xf32>
    %cst_23 = arith.constant 0.000000e+00 : f32
    %38 = vector.broadcast %cst_23 : f32 to vector<8x128xf32>
    %c0_24 = arith.constant 0 : index
    %c0_25 = arith.constant 0 : index
    %39 = vector.load %arg27[%c0_24, %c0_25] : memref<75x128xf32, #tpu.memory_space<vmem>>, vector<8x128xf32>
    tpu.vector_store %arg27[%c0_24, %c0_25], %38 {strides = array<i32>} : memref<75x128xf32, #tpu.memory_space<vmem>>, vector<8x128xf32>,
    %cst_26 = arith.constant 0.000000e+00 : f32
    %40 = vector.broadcast %cst_26 : f32 to vector<3x128xf32>
    %c72 = arith.constant 72 : index
    %c0_27 = arith.constant 0 : index
    %41 = vector.load %arg27[%c72, %c0_27] : memref<75x128xf32, #tpu.memory_space<vmem>>, vector<3x128xf32>
    tpu.vector_store %arg27[%c72, %c0_27], %40 {strides = array<i32>} : memref<75x128xf32, #tpu.memory_space<vmem>>, vector<3x128xf32>,
    %c8 = arith.constant 8 : index
    %c0_28 = arith.constant 0 : index
    %42 = vector.load %arg27[%c8, %c0_28] : memref<75x128xf32, #tpu.memory_space<vmem>>, vector<64x128xf32>
    tpu.vector_store %arg27[%c8, %c0_28], %37 {strides = array<i32>} : memref<75x128xf32, #tpu.memory_space<vmem>>, vector<64x128xf32>,
    %c5 = arith.constant 5 : index
    %c0_29 = arith.constant 0 : index
    %43 = tpu.strided_load %arg27[%c5, %c0_29] {strides = array<i32: 8, 1>} : memref<75x128xf32, #tpu.memory_space<vmem>>, vector<8x128xf32>
    %c6 = arith.constant 6 : index
    %c0_30 = arith.constant 0 : index
    %44 = tpu.strided_load %arg27[%c6, %c0_30] {strides = array<i32: 8, 1>} : memref<75x128xf32, #tpu.memory_space<vmem>>, vector<8x128xf32>
    %c7 = arith.constant 7 : index
    %c0_31 = arith.constant 0 : index
    %45 = tpu.strided_load %arg27[%c7, %c0_31] {strides = array<i32: 8, 1>} : memref<75x128xf32, #tpu.memory_space<vmem>>, vector<8x128xf32>
    %c8_32 = arith.constant 8 : index
    %c0_33 = arith.constant 0 : index
    %46 = tpu.strided_load %arg27[%c8_32, %c0_33] {strides = array<i32: 8, 1>} : memref<75x128xf32, #tpu.memory_space<vmem>>, vector<8x128xf32>
    %c9 = arith.constant 9 : index
    %c0_34 = arith.constant 0 : index
    %47 = tpu.strided_load %arg27[%c9, %c0_34] {strides = array<i32: 8, 1>} : memref<75x128xf32, #tpu.memory_space<vmem>>, vector<8x128xf32>
    %c10 = arith.constant 10 : index
    %c0_35 = arith.constant 0 : index
    %48 = tpu.strided_load %arg27[%c10, %c0_35] {strides = array<i32: 8, 1>} : memref<75x128xf32, #tpu.memory_space<vmem>>, vector<8x128xf32>
    %c11 = arith.constant 11 : index
    %c0_36 = arith.constant 0 : index
    %49 = tpu.strided_load %arg27[%c11, %c0_36] {strides = array<i32: 8, 1>} : memref<75x128xf32, #tpu.memory_space<vmem>>, vector<8x128xf32>
    %50 = tpu.concatenate %43, %44, %45, %46, %47, %48, %49 in 1 : vector<8x128xf32>, vector<8x128xf32>, vector<8x128xf32>, vector<8x128xf32>, vector<8x128xf32>, vector<8x128xf32>, vector<8x128xf32> -> vector<8x896xf32>
    %c7_37 = arith.constant 7 : index
    %c0_38 = arith.constant 0 : index
    %51 = tpu.strided_load %arg27[%c7_37, %c0_38] {strides = array<i32: 8, 1>} : memref<75x128xf32, #tpu.memory_space<vmem>>, vector<8x128xf32>
    %c8_39 = arith.constant 8 : index
    %c0_40 = arith.constant 0 : index
    %52 = tpu.strided_load %arg27[%c8_39, %c0_40] {strides = array<i32: 8, 1>} : memref<75x128xf32, #tpu.memory_space<vmem>>, vector<8x128xf32>
    %c9_41 = arith.constant 9 : index
    %c0_42 = arith.constant 0 : index
    %53 = tpu.strided_load %arg27[%c9_41, %c0_42] {strides = array<i32: 8, 1>} : memref<75x128xf32, #tpu.memory_space<vmem>>, vector<8x128xf32>
    %c10_43 = arith.constant 10 : index
    %c0_44 = arith.constant 0 : index
    %54 = tpu.strided_load %arg27[%c10_43, %c0_44] {strides = array<i32: 8, 1>} : memref<75x128xf32, #tpu.memory_space<vmem>>, vector<8x128xf32>
    %c11_45 = arith.constant 11 : index
    %c0_46 = arith.constant 0 : index
    %55 = tpu.strided_load %arg27[%c11_45, %c0_46] {strides = array<i32: 8, 1>} : memref<75x128xf32, #tpu.memory_space<vmem>>, vector<8x128xf32>
    %c12 = arith.constant 12 : index
    %c0_47 = arith.constant 0 : index
    %56 = tpu.strided_load %arg27[%c12, %c0_47] {strides = array<i32: 8, 1>} : memref<75x128xf32, #tpu.memory_space<vmem>>, vector<8x128xf32>
    %c13 = arith.constant 13 : index
    %c0_48 = arith.constant 0 : index
    %57 = tpu.strided_load %arg27[%c13, %c0_48] {strides = array<i32: 8, 1>} : memref<75x128xf32, #tpu.memory_space<vmem>>, vector<8x128xf32>
    %58 = tpu.concatenate %51, %52, %53, %54, %55, %56, %57 in 1 : vector<8x128xf32>, vector<8x128xf32>, vector<8x128xf32>, vector<8x128xf32>, vector<8x128xf32>, vector<8x128xf32>, vector<8x128xf32> -> vector<8x896xf32>
    %c9_49 = arith.constant 9 : index
    %c0_50 = arith.constant 0 : index
    %59 = tpu.strided_load %arg27[%c9_49, %c0_50] {strides = array<i32: 8, 1>} : memref<75x128xf32, #tpu.memory_space<vmem>>, vector<8x128xf32>
    %c10_51 = arith.constant 10 : index
    %c0_52 = arith.constant 0 : index
    %60 = tpu.strided_load %arg27[%c10_51, %c0_52] {strides = array<i32: 8, 1>} : memref<75x128xf32, #tpu.memory_space<vmem>>, vector<8x128xf32>
    %c11_53 = arith.constant 11 : index
    %c0_54 = arith.constant 0 : index
    %61 = tpu.strided_load %arg27[%c11_53, %c0_54] {strides = array<i32: 8, 1>} : memref<75x128xf32, #tpu.memory_space<vmem>>, vector<8x128xf32>
    %c12_55 = arith.constant 12 : index
    %c0_56 = arith.constant 0 : index
    %62 = tpu.strided_load %arg27[%c12_55, %c0_56] {strides = array<i32: 8, 1>} : memref<75x128xf32, #tpu.memory_space<vmem>>, vector<8x128xf32>
    %c13_57 = arith.constant 13 : index
    %c0_58 = arith.constant 0 : index
    %63 = tpu.strided_load %arg27[%c13_57, %c0_58] {strides = array<i32: 8, 1>} : memref<75x128xf32, #tpu.memory_space<vmem>>, vector<8x128xf32>
    %c14 = arith.constant 14 : index
    %c0_59 = arith.constant 0 : index
    %64 = tpu.strided_load %arg27[%c14, %c0_59] {strides = array<i32: 8, 1>} : memref<75x128xf32, #tpu.memory_space<vmem>>, vector<8x128xf32>
    %c15 = arith.constant 15 : index
    %c0_60 = arith.constant 0 : index
    %65 = tpu.strided_load %arg27[%c15, %c0_60] {strides = array<i32: 8, 1>} : memref<75x128xf32, #tpu.memory_space<vmem>>, vector<8x128xf32>
    %66 = tpu.concatenate %59, %60, %61, %62, %63, %64, %65 in 1 : vector<8x128xf32>, vector<8x128xf32>, vector<8x128xf32>, vector<8x128xf32>, vector<8x128xf32>, vector<8x128xf32>, vector<8x128xf32> -> vector<8x896xf32>
    %c11_61 = arith.constant 11 : index
    %c0_62 = arith.constant 0 : index
    %67 = tpu.strided_load %arg27[%c11_61, %c0_62] {strides = array<i32: 8, 1>} : memref<75x128xf32, #tpu.memory_space<vmem>>, vector<8x128xf32>
    %c12_63 = arith.constant 12 : index
    %c0_64 = arith.constant 0 : index
    %68 = tpu.strided_load %arg27[%c12_63, %c0_64] {strides = array<i32: 8, 1>} : memref<75x128xf32, #tpu.memory_space<vmem>>, vector<8x128xf32>
    %c13_65 = arith.constant 13 : index
    %c0_66 = arith.constant 0 : index
    %69 = tpu.strided_load %arg27[%c13_65, %c0_66] {strides = array<i32: 8, 1>} : memref<75x128xf32, #tpu.memory_space<vmem>>, vector<8x128xf32>
    %c14_67 = arith.constant 14 : index
    %c0_68 = arith.constant 0 : index
    %70 = tpu.strided_load %arg27[%c14_67, %c0_68] {strides = array<i32: 8, 1>} : memref<75x128xf32, #tpu.memory_space<vmem>>, vector<8x128xf32>
    %c15_69 = arith.constant 15 : index
    %c0_70 = arith.constant 0 : index
    %71 = tpu.strided_load %arg27[%c15_69, %c0_70] {strides = array<i32: 8, 1>} : memref<75x128xf32, #tpu.memory_space<vmem>>, vector<8x128xf32>
    %c16 = arith.constant 16 : index
    %c0_71 = arith.constant 0 : index
    %72 = tpu.strided_load %arg27[%c16, %c0_71] {strides = array<i32: 8, 1>} : memref<75x128xf32, #tpu.memory_space<vmem>>, vector<8x128xf32>
    %c17 = arith.constant 17 : index
    %c0_72 = arith.constant 0 : index
    %73 = tpu.strided_load %arg27[%c17, %c0_72] {strides = array<i32: 8, 1>} : memref<75x128xf32, #tpu.memory_space<vmem>>, vector<8x128xf32>
    %74 = tpu.concatenate %67, %68, %69, %70, %71, %72, %73 in 1 : vector<8x128xf32>, vector<8x128xf32>, vector<8x128xf32>, vector<8x128xf32>, vector<8x128xf32>, vector<8x128xf32>, vector<8x128xf32> -> vector<8x896xf32>
    %75 = tpu.concatenate %50, %58, %66, %74 in 0 : vector<8x896xf32>, vector<8x896xf32>, vector<8x896xf32>, vector<8x896xf32> -> vector<32x896xf32>
    %76 = arith.truncf %75 : vector<32x896xf32> to vector<32x896xbf16>
    %c0_73 = arith.constant 0 : index
    %c0_74 = arith.constant 0 : index
    %77 = vector.load %arg10[%c0_73, %c0_74] : memref<896x128xbf16, #tpu.memory_space<vmem>>, vector<896x128xbf16>
    %cst_75 = arith.constant dense<0.000000e+00> : vector<32x128xf32>
    %78 = tpu.matmul %76, %77, %cst_75 {dimension_numbers = #tpu.dot_dimension_numbers<[1], [0], [0], [1], [0, 0, 1, 1], [], []>} : vector<32x896xbf16>, vector<896x128xbf16>, vector<32x128xf32> -> vector<32x128xf32>
    %c0_76 = arith.constant 0 : index
    %c0_77 = arith.constant 0 : index
    %79 = vector.load %arg11[%c0_76, %c0_77] : memref<1x128xf32, #tpu.memory_space<vmem>>, vector<1x128xf32>
    %80 = vector.broadcast %79 : vector<1x128xf32> to vector<32x128xf32>
    %81 = arith.addf %78, %80 : vector<32x128xf32>
    %cst_78 = arith.constant 0.000000e+00 : f32
    %82 = vector.broadcast %cst_78 : f32 to vector<32x128xf32>
    %83 = arith.maximumf %81, %82 : vector<32x128xf32>
    %84 = arith.truncf %83 : vector<32x128xf32> to vector<32x128xbf16>
    %c0_79 = arith.constant 0 : index
    %c0_80 = arith.constant 0 : index
    %85 = vector.load %arg12[%c0_79, %c0_80] : memref<128x256xbf16, #tpu.memory_space<vmem>>, vector<128x256xbf16>
    %cst_81 = arith.constant dense<0.000000e+00> : vector<32x256xf32>
    %86 = tpu.matmul %84, %85, %cst_81 {dimension_numbers = #tpu.dot_dimension_numbers<[1], [0], [0], [1], [0, 0, 1, 1], [], []>} : vector<32x128xbf16>, vector<128x256xbf16>, vector<32x256xf32> -> vector<32x256xf32>
    %c0_82 = arith.constant 0 : index
    %c0_83 = arith.constant 0 : index
    %87 = vector.load %arg13[%c0_82, %c0_83] : memref<1x256xf32, #tpu.memory_space<vmem>>, vector<1x256xf32>
    %88 = vector.broadcast %87 : vector<1x256xf32> to vector<32x256xf32>
    %89 = arith.addf %86, %88 : vector<32x256xf32>
    %cst_84 = arith.constant 0.000000e+00 : f32
    %90 = vector.broadcast %cst_84 : f32 to vector<32x256xf32>
    %91 = arith.maximumf %89, %90 : vector<32x256xf32>
    %92 = arith.truncf %91 : vector<32x256xf32> to vector<32x256xbf16>
    %c0_85 = arith.constant 0 : index
    %c0_86 = arith.constant 0 : index
    %93 = vector.load %arg14[%c0_85, %c0_86] : memref<256x128xbf16, #tpu.memory_space<vmem>>, vector<256x128xbf16>
    %cst_87 = arith.constant dense<0.000000e+00> : vector<32x128xf32>
    %94 = tpu.matmul %92, %93, %cst_87 {dimension_numbers = #tpu.dot_dimension_numbers<[1], [0], [0], [1], [0, 0, 1, 1], [], []>} : vector<32x256xbf16>, vector<256x128xbf16>, vector<32x128xf32> -> vector<32x128xf32>
    %c0_88 = arith.constant 0 : index
    %c0_89 = arith.constant 0 : index
    %95 = vector.load %arg15[%c0_88, %c0_89] : memref<1x128xf32, #tpu.memory_space<vmem>>, vector<1x128xf32>
    %96 = vector.broadcast %95 : vector<1x128xf32> to vector<32x128xf32>
    %97 = arith.addf %94, %96 : vector<32x128xf32>
    %98 = vector.extract_strided_slice %75 {offsets = [0, 384], sizes = [32, 128], strides = [1, 1]} : vector<32x896xf32> to vector<32x128xf32>
    %99 = arith.truncf %98 : vector<32x128xf32> to vector<32x128xbf16>
    %c0_90 = arith.constant 0 : index
    %c0_91 = arith.constant 0 : index
    %100 = vector.load %arg16[%c0_90, %c0_91] : memref<128x128xbf16, #tpu.memory_space<vmem>>, vector<128x128xbf16>
    %cst_92 = arith.constant dense<0.000000e+00> : vector<32x128xf32>
    %101 = tpu.matmul %99, %100, %cst_92 {dimension_numbers = #tpu.dot_dimension_numbers<[1], [0], [0], [1], [0, 0, 1, 1], [], []>} : vector<32x128xbf16>, vector<128x128xbf16>, vector<32x128xf32> -> vector<32x128xf32>
    %102 = arith.addf %97, %101 : vector<32x128xf32>
    %c0_93 = arith.constant 0 : index
    %c0_94 = arith.constant 0 : index
    %103 = vector.load %arg17[%c0_93, %c0_94] : memref<1x128xf32, #tpu.memory_space<vmem>>, vector<1x128xf32>
    %104 = vector.broadcast %103 : vector<1x128xf32> to vector<32x128xf32>
    %105 = arith.addf %102, %104 : vector<32x128xf32>
    %cst_95 = arith.constant 0.000000e+00 : f32
    %106 = vector.broadcast %cst_95 : f32 to vector<32x128xf32>
    %107 = arith.maximumf %105, %106 : vector<32x128xf32>
    %108 = vector.extract_strided_slice %107 {offsets = [0, 0], sizes = [8, 128], strides = [1, 1]} : vector<32x128xf32> to vector<8x128xf32>
    %109 = vector.extract_strided_slice %107 {offsets = [8, 0], sizes = [8, 128], strides = [1, 1]} : vector<32x128xf32> to vector<8x128xf32>
    %110 = arith.maximumf %108, %109 : vector<8x128xf32>
    %111 = vector.extract_strided_slice %107 {offsets = [16, 0], sizes = [8, 128], strides = [1, 1]} : vector<32x128xf32> to vector<8x128xf32>
    %112 = arith.maximumf %110, %111 : vector<8x128xf32>
    %113 = vector.extract_strided_slice %107 {offsets = [24, 0], sizes = [8, 128], strides = [1, 1]} : vector<32x128xf32> to vector<8x128xf32>
    %114 = arith.maximumf %112, %113 : vector<8x128xf32>
    %cst_96 = arith.constant 0.000000e+00 : f32
    %115 = vector.broadcast %cst_96 : f32 to vector<8x128xf32>
    %c0_97 = arith.constant 0 : index
    %c0_98 = arith.constant 0 : index
    %116 = vector.load %arg28[%c0_97, %c0_98] : memref<19x128xf32, #tpu.memory_space<vmem>>, vector<8x128xf32>
    tpu.vector_store %arg28[%c0_97, %c0_98], %115 {strides = array<i32>} : memref<19x128xf32, #tpu.memory_space<vmem>>, vector<8x128xf32>,
    %cst_99 = arith.constant 0.000000e+00 : f32
    %117 = vector.broadcast %cst_99 : f32 to vector<3x128xf32>
    %c16_100 = arith.constant 16 : index
    %c0_101 = arith.constant 0 : index
    %118 = vector.load %arg28[%c16_100, %c0_101] : memref<19x128xf32, #tpu.memory_space<vmem>>, vector<3x128xf32>
    tpu.vector_store %arg28[%c16_100, %c0_101], %117 {strides = array<i32>} : memref<19x128xf32, #tpu.memory_space<vmem>>, vector<3x128xf32>,
    %c8_102 = arith.constant 8 : index
    %c0_103 = arith.constant 0 : index
    %119 = vector.load %arg28[%c8_102, %c0_103] : memref<19x128xf32, #tpu.memory_space<vmem>>, vector<8x128xf32>
    tpu.vector_store %arg28[%c8_102, %c0_103], %114 {strides = array<i32>} : memref<19x128xf32, #tpu.memory_space<vmem>>, vector<8x128xf32>,
    %c5_104 = arith.constant 5 : index
    %c0_105 = arith.constant 0 : index
    %120 = tpu.strided_load %arg28[%c5_104, %c0_105] {strides = array<i32: 2, 1>} : memref<19x128xf32, #tpu.memory_space<vmem>>, vector<4x128xf32>
    %c6_106 = arith.constant 6 : index
    %c0_107 = arith.constant 0 : index
    %121 = tpu.strided_load %arg28[%c6_106, %c0_107] {strides = array<i32: 2, 1>} : memref<19x128xf32, #tpu.memory_space<vmem>>, vector<4x128xf32>
    %c7_108 = arith.constant 7 : index
    %c0_109 = arith.constant 0 : index
    %122 = tpu.strided_load %arg28[%c7_108, %c0_109] {strides = array<i32: 2, 1>} : memref<19x128xf32, #tpu.memory_space<vmem>>, vector<4x128xf32>
    %c8_110 = arith.constant 8 : index
    %c0_111 = arith.constant 0 : index
    %123 = tpu.strided_load %arg28[%c8_110, %c0_111] {strides = array<i32: 2, 1>} : memref<19x128xf32, #tpu.memory_space<vmem>>, vector<4x128xf32>
    %c9_112 = arith.constant 9 : index
    %c0_113 = arith.constant 0 : index
    %124 = tpu.strided_load %arg28[%c9_112, %c0_113] {strides = array<i32: 2, 1>} : memref<19x128xf32, #tpu.memory_space<vmem>>, vector<4x128xf32>
    %c10_114 = arith.constant 10 : index
    %c0_115 = arith.constant 0 : index
    %125 = tpu.strided_load %arg28[%c10_114, %c0_115] {strides = array<i32: 2, 1>} : memref<19x128xf32, #tpu.memory_space<vmem>>, vector<4x128xf32>
    %c11_116 = arith.constant 11 : index
    %c0_117 = arith.constant 0 : index
    %126 = tpu.strided_load %arg28[%c11_116, %c0_117] {strides = array<i32: 2, 1>} : memref<19x128xf32, #tpu.memory_space<vmem>>, vector<4x128xf32>
    %127 = tpu.concatenate %120, %121, %122, %123, %124, %125, %126 in 1 : vector<4x128xf32>, vector<4x128xf32>, vector<4x128xf32>, vector<4x128xf32>, vector<4x128xf32>, vector<4x128xf32>, vector<4x128xf32> -> vector<4x896xf32>
    %128 = arith.truncf %127 : vector<4x896xf32> to vector<4x896xbf16>
    %c0_118 = arith.constant 0 : index
    %c0_119 = arith.constant 0 : index
    %129 = vector.load %arg18[%c0_118, %c0_119] : memref<896x128xbf16, #tpu.memory_space<vmem>>, vector<896x128xbf16>
    %cst_120 = arith.constant dense<0.000000e+00> : vector<4x128xf32>
    %130 = tpu.matmul %128, %129, %cst_120 {dimension_numbers = #tpu.dot_dimension_numbers<[1], [0], [0], [1], [0, 0, 1, 1], [], []>} : vector<4x896xbf16>, vector<896x128xbf16>, vector<4x128xf32> -> vector<4x128xf32>
    %c0_121 = arith.constant 0 : index
    %c0_122 = arith.constant 0 : index
    %131 = vector.load %arg19[%c0_121, %c0_122] : memref<1x128xf32, #tpu.memory_space<vmem>>, vector<1x128xf32>
    %132 = vector.broadcast %131 : vector<1x128xf32> to vector<4x128xf32>
    %133 = arith.addf %130, %132 : vector<4x128xf32>
    %cst_123 = arith.constant 0.000000e+00 : f32
    %134 = vector.broadcast %cst_123 : f32 to vector<4x128xf32>
    %135 = arith.maximumf %133, %134 : vector<4x128xf32>
    %136 = arith.truncf %135 : vector<4x128xf32> to vector<4x128xbf16>
    %c0_124 = arith.constant 0 : index
    %c0_125 = arith.constant 0 : index
    %137 = vector.load %arg20[%c0_124, %c0_125] : memref<128x256xbf16, #tpu.memory_space<vmem>>, vector<128x256xbf16>
    %cst_126 = arith.constant dense<0.000000e+00> : vector<4x256xf32>
    %138 = tpu.matmul %136, %137, %cst_126 {dimension_numbers = #tpu.dot_dimension_numbers<[1], [0], [0], [1], [0, 0, 1, 1], [], []>} : vector<4x128xbf16>, vector<128x256xbf16>, vector<4x256xf32> -> vector<4x256xf32>
    %c0_127 = arith.constant 0 : index
    %c0_128 = arith.constant 0 : index
    %139 = vector.load %arg21[%c0_127, %c0_128] : memref<1x256xf32, #tpu.memory_space<vmem>>, vector<1x256xf32>
    %140 = vector.broadcast %139 : vector<1x256xf32> to vector<4x256xf32>
    %141 = arith.addf %138, %140 : vector<4x256xf32>
    %cst_129 = arith.constant 0.000000e+00 : f32
    %142 = vector.broadcast %cst_129 : f32 to vector<4x256xf32>
    %143 = arith.maximumf %141, %142 : vector<4x256xf32>
    %144 = arith.truncf %143 : vector<4x256xf32> to vector<4x256xbf16>
    %c0_130 = arith.constant 0 : index
    %c0_131 = arith.constant 0 : index
    %145 = vector.load %arg22[%c0_130, %c0_131] : memref<256x128xbf16, #tpu.memory_space<vmem>>, vector<256x128xbf16>
    %cst_132 = arith.constant dense<0.000000e+00> : vector<4x128xf32>
    %146 = tpu.matmul %144, %145, %cst_132 {dimension_numbers = #tpu.dot_dimension_numbers<[1], [0], [0], [1], [0, 0, 1, 1], [], []>} : vector<4x256xbf16>, vector<256x128xbf16>, vector<4x128xf32> -> vector<4x128xf32>
    %c0_133 = arith.constant 0 : index
    %c0_134 = arith.constant 0 : index
    %147 = vector.load %arg23[%c0_133, %c0_134] : memref<1x128xf32, #tpu.memory_space<vmem>>, vector<1x128xf32>
    %148 = vector.broadcast %147 : vector<1x128xf32> to vector<4x128xf32>
    %149 = arith.addf %146, %148 : vector<4x128xf32>
    %150 = vector.extract_strided_slice %127 {offsets = [0, 384], sizes = [4, 128], strides = [1, 1]} : vector<4x896xf32> to vector<4x128xf32>
    %151 = arith.truncf %150 : vector<4x128xf32> to vector<4x128xbf16>
    %c0_135 = arith.constant 0 : index
    %c0_136 = arith.constant 0 : index
    %152 = vector.load %arg24[%c0_135, %c0_136] : memref<128x128xbf16, #tpu.memory_space<vmem>>, vector<128x128xbf16>
    %cst_137 = arith.constant dense<0.000000e+00> : vector<4x128xf32>
    %153 = tpu.matmul %151, %152, %cst_137 {dimension_numbers = #tpu.dot_dimension_numbers<[1], [0], [0], [1], [0, 0, 1, 1], [], []>} : vector<4x128xbf16>, vector<128x128xbf16>, vector<4x128xf32> -> vector<4x128xf32>
    %154 = arith.addf %149, %153 : vector<4x128xf32>
    %c0_138 = arith.constant 0 : index
    %c0_139 = arith.constant 0 : index
    %155 = vector.load %arg25[%c0_138, %c0_139] : memref<1x128xf32, #tpu.memory_space<vmem>>, vector<1x128xf32>
    %156 = vector.broadcast %155 : vector<1x128xf32> to vector<4x128xf32>
    %157 = arith.addf %154, %156 : vector<4x128xf32>
    %cst_140 = arith.constant 0.000000e+00 : f32
    %158 = vector.broadcast %cst_140 : f32 to vector<4x128xf32>
    %159 = arith.maximumf %157, %158 : vector<4x128xf32>
    %c0_141 = arith.constant 0 : index
    %c0_142 = arith.constant 0 : index
    %c0_143 = arith.constant 0 : index
    %160 = vector.load %arg26[%c0_141, %c0_142, %c0_143] : memref<1x4x128xf32, #tpu.memory_space<vmem>>, vector<1x4x128xf32>
    %161 = vector.shape_cast %160 : vector<1x4x128xf32> to vector<4x128xf32>
    %162 = vector.shape_cast %159 : vector<4x128xf32> to vector<1x4x128xf32>
    tpu.vector_store %arg26[%c0_141, %c0_142, %c0_143], %162 {strides = array<i32>} : memref<1x4x128xf32, #tpu.memory_space<vmem>>, vector<1x4x128xf32>,
    return
  }
  func.func @transform_0(%arg0: i32) -> (i32, i32, i32) {
    %c0_i32 = arith.constant 0 : i32
    %c0_i32_0 = arith.constant 0 : i32
    %c0_i32_1 = arith.constant 0 : i32
    return %arg0, %c0_i32, %c0_i32_0 : i32, i32, i32
  }
  func.func @transform_1(%arg0: i32) -> (i32, i32) {
    %c0_i32 = arith.constant 0 : i32
    %c0_i32_0 = arith.constant 0 : i32
    %c0_i32_1 = arith.constant 0 : i32
    return %c0_i32, %c0_i32_0 : i32, i32
  }
  func.func @transform_2(%arg0: i32) -> (i32, i32) {
    %c0_i32 = arith.constant 0 : i32
    %c0_i32_0 = arith.constant 0 : i32
    %c0_i32_1 = arith.constant 0 : i32
    return %c0_i32, %c0_i32_0 : i32, i32
  }
  func.func @transform_3(%arg0: i32) -> (i32, i32) {
    %c0_i32 = arith.constant 0 : i32
    %c0_i32_0 = arith.constant 0 : i32
    %c0_i32_1 = arith.constant 0 : i32
    return %c0_i32, %c0_i32_0 : i32, i32
  }
  func.func @transform_4(%arg0: i32) -> (i32, i32) {
    %c0_i32 = arith.constant 0 : i32
    %c0_i32_0 = arith.constant 0 : i32
    %c0_i32_1 = arith.constant 0 : i32
    return %c0_i32, %c0_i32_0 : i32, i32
  }
  func.func @transform_5(%arg0: i32) -> (i32, i32) {
    %c0_i32 = arith.constant 0 : i32
    %c0_i32_0 = arith.constant 0 : i32
    %c0_i32_1 = arith.constant 0 : i32
    return %c0_i32, %c0_i32_0 : i32, i32
  }
  func.func @transform_6(%arg0: i32) -> (i32, i32) {
    %c0_i32 = arith.constant 0 : i32
    %c0_i32_0 = arith.constant 0 : i32
    %c0_i32_1 = arith.constant 0 : i32
    return %c0_i32, %c0_i32_0 : i32, i32
  }
  func.func @transform_7(%arg0: i32) -> (i32, i32) {
    %c0_i32 = arith.constant 0 : i32
    %c0_i32_0 = arith.constant 0 : i32
    %c0_i32_1 = arith.constant 0 : i32
    return %c0_i32, %c0_i32_0 : i32, i32
  }
  func.func @transform_8(%arg0: i32) -> (i32, i32) {
    %c0_i32 = arith.constant 0 : i32
    %c0_i32_0 = arith.constant 0 : i32
    %c0_i32_1 = arith.constant 0 : i32
    return %c0_i32, %c0_i32_0 : i32, i32
  }
  func.func @transform_9(%arg0: i32) -> (i32, i32) {
    %c0_i32 = arith.constant 0 : i32
    %c0_i32_0 = arith.constant 0 : i32
    %c0_i32_1 = arith.constant 0 : i32
    return %c0_i32, %c0_i32_0 : i32, i32
  }
  func.func @transform_10(%arg0: i32) -> (i32, i32) {
    %c0_i32 = arith.constant 0 : i32
    %c0_i32_0 = arith.constant 0 : i32
    %c0_i32_1 = arith.constant 0 : i32
    return %c0_i32, %c0_i32_0 : i32, i32
  }
  func.func @transform_11(%arg0: i32) -> (i32, i32) {
    %c0_i32 = arith.constant 0 : i32
    %c0_i32_0 = arith.constant 0 : i32
    %c0_i32_1 = arith.constant 0 : i32
    return %c0_i32, %c0_i32_0 : i32, i32
  }
  func.func @transform_12(%arg0: i32) -> (i32, i32) {
    %c0_i32 = arith.constant 0 : i32
    %c0_i32_0 = arith.constant 0 : i32
    %c0_i32_1 = arith.constant 0 : i32
    return %c0_i32, %c0_i32_0 : i32, i32
  }
  func.func @transform_13(%arg0: i32) -> (i32, i32) {
    %c0_i32 = arith.constant 0 : i32
    %c0_i32_0 = arith.constant 0 : i32
    %c0_i32_1 = arith.constant 0 : i32
    return %c0_i32, %c0_i32_0 : i32, i32
  }
  func.func @transform_14(%arg0: i32) -> (i32, i32) {
    %c0_i32 = arith.constant 0 : i32
    %c0_i32_0 = arith.constant 0 : i32
    %c0_i32_1 = arith.constant 0 : i32
    return %c0_i32, %c0_i32_0 : i32, i32
  }
  func.func @transform_15(%arg0: i32) -> (i32, i32) {
    %c0_i32 = arith.constant 0 : i32
    %c0_i32_0 = arith.constant 0 : i32
    %c0_i32_1 = arith.constant 0 : i32
    return %c0_i32, %c0_i32_0 : i32, i32
  }
  func.func @transform_16(%arg0: i32) -> (i32, i32) {
    %c0_i32 = arith.constant 0 : i32
    %c0_i32_0 = arith.constant 0 : i32
    %c0_i32_1 = arith.constant 0 : i32
    return %c0_i32, %c0_i32_0 : i32, i32
  }
  func.func @transform_17(%arg0: i32) -> (i32, i32) {
    %c0_i32 = arith.constant 0 : i32
    %c0_i32_0 = arith.constant 0 : i32
    %c0_i32_1 = arith.constant 0 : i32
    return %c0_i32, %c0_i32_0 : i32, i32
  }
  func.func @transform_18(%arg0: i32) -> (i32, i32) {
    %c0_i32 = arith.constant 0 : i32
    %c0_i32_0 = arith.constant 0 : i32
    %c0_i32_1 = arith.constant 0 : i32
    return %c0_i32, %c0_i32_0 : i32, i32
  }
  func.func @transform_19(%arg0: i32) -> (i32, i32) {
    %c0_i32 = arith.constant 0 : i32
    %c0_i32_0 = arith.constant 0 : i32
    %c0_i32_1 = arith.constant 0 : i32
    return %c0_i32, %c0_i32_0 : i32, i32
  }
  func.func @transform_20(%arg0: i32) -> (i32, i32) {
    %c0_i32 = arith.constant 0 : i32
    %c0_i32_0 = arith.constant 0 : i32
    %c0_i32_1 = arith.constant 0 : i32
    return %c0_i32, %c0_i32_0 : i32, i32
  }
  func.func @transform_21(%arg0: i32) -> (i32, i32) {
    %c0_i32 = arith.constant 0 : i32
    %c0_i32_0 = arith.constant 0 : i32
    %c0_i32_1 = arith.constant 0 : i32
    return %c0_i32, %c0_i32_0 : i32, i32
  }
  func.func @transform_22(%arg0: i32) -> (i32, i32) {
    %c0_i32 = arith.constant 0 : i32
    %c0_i32_0 = arith.constant 0 : i32
    %c0_i32_1 = arith.constant 0 : i32
    return %c0_i32, %c0_i32_0 : i32, i32
  }
  func.func @transform_23(%arg0: i32) -> (i32, i32) {
    %c0_i32 = arith.constant 0 : i32
    %c0_i32_0 = arith.constant 0 : i32
    %c0_i32_1 = arith.constant 0 : i32
    return %c0_i32, %c0_i32_0 : i32, i32
  }
  func.func @transform_24(%arg0: i32) -> (i32, i32) {
    %c0_i32 = arith.constant 0 : i32
    %c0_i32_0 = arith.constant 0 : i32
    %c0_i32_1 = arith.constant 0 : i32
    return %c0_i32, %c0_i32_0 : i32, i32
  }
  func.func @transform_25(%arg0: i32) -> (i32, i32, i32) {
    %c0_i32 = arith.constant 0 : i32
    %c0_i32_0 = arith.constant 0 : i32
    %c0_i32_1 = arith.constant 0 : i32
    return %arg0, %c0_i32, %c0_i32_0 : i32, i32, i32
  }
}

</mosaic_0001>

<bundles_post_ra>
// kernel: fe_forward.1
= control target key start
LH: loop header
LB: loop body
LE: loop exit
PB: predicated region body
PF: predicated region fallthrough
CT: control target
= control target key end

     0   :  { %s6130_s0 = inlined_call_operand.vmem [shape: bf16[2,128,128], index: 0, kind: input, shape index: {}]   ;;  %s6131_s1 = inlined_call_operand.vmem [shape: bf16[128,128], index: 1, kind: input, shape index: {}]   ;;  %s6132_s2 = inlined_call_operand.vmem [shape: f32[1,128], index: 2, kind: input, shape index: {}]   ;;  %s6133_s3 = inlined_call_operand.vmem [shape: bf16[128,128], index: 3, kind: input, shape index: {}]   ;;  %s6134_s4 = inlined_call_operand.vmem [shape: f32[1,128], index: 4, kind: input, shape index: {}]   ;;  %s6135_s5 = inlined_call_operand.vmem [shape: bf16[128,128], index: 5, kind: input, shape index: {}]   ;;  %s6136_s6 = inlined_call_operand.vmem [shape: f32[1,128], index: 6, kind: input, shape index: {}]   ;;  %s6137_s7 = inlined_call_operand.vmem [shape: f32[1,128], index: 7, kind: input, shape index: {}]   ;;  %s6138_s8 = inlined_call_operand.vmem [shape: f32[1,128], index: 8, kind: input, shape index: {}]   ;;  %s6139_s9 = inlined_call_operand.vmem [shape: bf16[896,128], index: 9, kind: input, shape index: {}]   ;;  %s6140_s10 = inlined_call_operand.vmem [shape: f32[1,128], index: 10, kind: input, shape index: {}]   ;;  %s6141_s11 = inlined_call_operand.vmem [shape: bf16[128,256], index: 11, kind: input, shape index: {}]   ;;  %s6142_s12 = inlined_call_operand.vmem [shape: f32[1,256], index: 12, kind: input, shape index: {}]   ;;  %s6143_s13 = inlined_call_operand.vmem [shape: bf16[256,128], index: 13, kind: input, shape index: {}]   ;;  %s6144_s14 = inlined_call_operand.vmem [shape: f32[1,128], index: 14, kind: input, shape index: {}]   ;;  %s6145_s15 = inlined_call_operand.vmem [shape: bf16[128,128], index: 15, kind: input, shape index: {}]   ;;  %s6146_s16 = inlined_call_operand.vmem [shape: f32[1,128], index: 16, kind: input, shape index: {}]   ;;  %s6147_s17 = inlined_call_operand.vmem [shape: bf16[896,128], index: 17, kind: input, shape index: {}]   ;;  %s6148_s18 = inlined_call_operand.vmem [shape: f32[1,128], index: 18, kind: input, shape index: {}]   ;;  %s6149_s19 = inlined_call_operand.vmem [shape: bf16[128,256], index: 19, kind: input, shape index: {}]   ;;  %s6150_s20 = inlined_call_operand.vmem [shape: f32[1,256], index: 20, kind: input, shape index: {}]   ;;  %s6151_s21 = inlined_call_operand.vmem [shape: bf16[256,128], index: 21, kind: input, shape index: {}]   ;;  %s6152_s22 = inlined_call_operand.vmem [shape: f32[1,128], index: 22, kind: input, shape index: {}]   ;;  %s6153_s23 = inlined_call_operand.vmem [shape: bf16[128,128], index: 23, kind: input, shape index: {}]   ;;  %s6154_s24 = inlined_call_operand.vmem [shape: f32[1,128], index: 24, kind: input, shape index: {}]   ;;  %s6155_s25 = inlined_call_operand.hbm [shape: f32[2,4,128], index: 25, kind: output, shape index: {}]  }
   0x1   :  { %6170 = sst [smem:[#allocation13_spill]] %s6130_s0 }
   0x2   :  { %6171 = sst [smem:[#allocation14_spill]] %s6131_s1 }
   0x3   :  { %6172 = sst [smem:[#allocation15_spill]] %s6132_s2 }
   0x4   :  { %6173 = sst [smem:[#allocation16_spill]] %s6133_s3 }
   0x5   :  { %6174 = sst [smem:[#allocation17_spill]] %s6134_s4 }
   0x6   :  { %6175 = sst [smem:[#allocation18_spill]] %s6135_s5 }
   0x7   :  { %6176 = sst [smem:[#allocation19_spill]] %s6136_s6 }
   0x8   :  { %6177 = sst [smem:[#allocation20_spill]] %s6137_s7 }
   0x9   :  { %6178 = sst [smem:[#allocation21_spill]] %s6138_s8 }
   0xa   :  { %6179 = sst [smem:[#allocation22_spill]] %s6139_s9 }
   0xb   :  { %6180 = sst [smem:[#allocation23_spill]] %s6155_s25 }
   0xc   :  { %30 = vsyncpa [#allocation5], 0 }
   0xd   :  { %32 = vsyncpa [#allocation5 + $0x1], 0  ;;  %s5182_s29 = smov 0   ;;  %s5184_s2 = smov 0  }
   0xe   :  { %s5186_s6 = smov 0   ;;  %s5188_s30 = smov 0  }
   0xf LB: > { %6181 = sst [smem:[#allocation7_spill]] %s5034_s29  ;;  %s5203_s7 = sadd.s32 4294967295, %s5046_s30   ;;  %s5046_s30 = sphi %s5188_s30, %s6204_s30   ;;  %s5042_s6 = sphi %s5186_s6, %s6206_s6   ;;  %s5038_s2 = sphi %s5184_s2, %s6208_s2   ;;  %s5034_s29 = sphi %s5182_s29, %s6207_s29  }
  0x10   : > { %6182 = sst [smem:[#allocation8_spill]] %s5042_s6  ;;  %s3941_s3 = sadd.s32 4294967294, %s5046_s30  }
  0x11   : > { %6183 = sst [smem:[#allocation9_spill]] %s5046_s30  ;;  %s5207_s26 = sadd.s32 1, %s5046_s30  }
  0x12   : > { %6184 = sst [smem:[#allocation10_spill]] %s5207_s26  ;;  %s575_s1 = sadd.s32 1, %s5042_s6 }
  0x13   : > { %s572_s8 = ssub.s32 %s5046_s30, %s5207_s26  ;;  %p585_p0 = scmp.ne.s32.totalorder %s5042_s6, %s5038_s2 }
  0x14   : > { %p573_p1 = scmp.eq.s32.totalorder %s572_s8, 0  ;;  %p586_p2 = scmp.eq.s32.totalorder %s5203_s7, 1 }
  0x15   : > { %p591_p3 = scmp.ne.s32.totalorder %s5038_s2, %s5034_s29  ;;  %p592_p4 = scmp.eq.s32.totalorder %s3941_s3, 1 }
  0x16   : > { %s5218_s27 = scalar_select %p573_p1, %s5042_s6, %s575_s1  }
  0x17   : > { %p5220_p5 = por %p586_p2, %p585_p0  ;;  %p5224_p6 = por %p592_p4, %p591_p3 }
  0x18   : > { %6185 = sst [smem:[#allocation11_spill]] %s5218_s27  ;;  %p3944_p7 = scmp.ge.s32.totalorder %s5046_s30, 1 }
  0x19   : > { %s6187_s28 = scalar_select %p5224_p6, 1, 0 }
  0x1a   : > { %p690_p8 = scmp.lt.s32.totalorder %s5046_s30, 3 }
  0x1b   : > { %6188 = sst [smem:[#allocation12_spill]] %s6187_s28 }
  0x1c   : > { %p691_p9 = pnand %p3944_p7, %p690_p8 }
  0x1d   : > { %s6189_s0 = sld [smem:[#allocation14_spill]] (!%p691_p9)  ;;  %p758_p10 = scmp.lt.s32.totalorder (!%p691_p9), %s5203_s7, 1  ;;  %vm5050_vm0 = vmmov (!%p691_p9), 0  }
  0x1e   : > { %694 = sbr.rel (%p691_p9) target bundleno = 2212 (0x8a4), region = 120  ;;  %s6190_s9 = sld [smem:[#allocation13_spill]] (!%p691_p9) }
  0x1f   : > { %s6192_s30 = sld [smem:[#allocation18_spill]] (!%p691_p9)  ;;  %s6194_s1 = sld [smem:[#allocation15_spill]] (!%p691_p9) }
  0x20   : > { %s6195_s25 = sld [smem:[#allocation17_spill]] (!%p691_p9)  ;;  %s6198_s27 = sld [smem:[#allocation19_spill]] (!%p691_p9) }
  0x23   : > { %v4734_v0 = vld [vmem:[%s6189_s0] sm:$0xff] (!%p691_p9)   ;;  %v4735_v1 = vld [vmem:[%s6189_s0 + $0x8] sm:$0xff] (!%p691_p9)   ;;  %v4736_v2 = vld [vmem:[%s6189_s0 + $0x10] sm:$0xff] (!%p691_p9)  }
  0x24   : > { %4474 = vmatprep.subr.bf16.mxu0 (!%p691_p9), %v4734_v0  ;;  %v4737_v3 = vld [vmem:[%s6189_s0 + $0x18] sm:$0xff] (!%p691_p9)   ;;  %v4738_v5 = vld [vmem:[%s6189_s0 + $0x20] sm:$0xff] (!%p691_p9)   ;;  %v4739_v9 = vld [vmem:[%s6189_s0 + $0x28] sm:$0xff] (!%p691_p9)  }
  0x25   : > { %s759_s8 = scalar_select %p758_p10, %s5203_s7, 1  ;;  %4475 = vmatpush3.bf16.msra.mxu0 %v4734_v0  ;;  %v4740_v11 = vld [vmem:[%s6189_s0 + $0x30] sm:$0xff]   ;;  %v4741_v13 = vld [vmem:[%s6189_s0 + $0x38] sm:$0xff]   ;;  %v4758_v24 = vld [vmem:[%s6192_s30] sm:$0xff]  }
  0x26   : > { %4476 = vmatprep.subr.bf16.mxu0 %v4735_v1  ;;  %s6193_s28 = smov %s6192_s30  ;;  %v3948_v30 = vld [vmem:[%s6194_s1] ss:$0 sm:$0xff]  ;;  %s6196_s1 = sld [smem:[#allocation22_spill]] }
  0x27   : > { %s4187_s26 = sshll.u32 %s759_s8, 6  ;;  %s6191_s8 = sld [smem:[#allocation16_spill]]  ;;  %v4759_v25 = vld [vmem:[%s6193_s28 + $0x8] sm:$0xff]   ;;  %v4760_v26 = vld [vmem:[%s6193_s28 + $0x10] sm:$0xff]   ;;  %v4761_v27 = vld [vmem:[%s6193_s28 + $0x18] sm:$0xff]  }
  0x28   : > { %s5244_s5 = scalar_lea.vmem %s6190_s9, %s4187_s26  ;;  %v4762_v28 = vld [vmem:[%s6193_s28 + $0x20] sm:$0xff]   ;;  %v4763_v29 = vld [vmem:[%s6193_s28 + $0x28] sm:$0xff]   ;;  %s6197_s9 = sld [smem:[#allocation20_spill]] }
  0x29   : > { %4477 = vmatpush3.bf16.msra.mxu0 %v4735_v1  ;;  %v764_v4 = vld [vmem:[%s5244_s5] sm:$0xff]   ;;  %v5278_v14 = vld [vmem:[%s5244_s5 + $0x8] sm:$0xff]   ;;  %v5284_v16 = vld [vmem:[%s5244_s5 + $0x10] sm:$0xff]   ;;  %s6200_s0 = sld [smem:[#allocation23_spill]] }
  0x2a   : > { %4478 = vmatprep.subr.bf16.mxu0 %v4736_v2  ;;  %4490 = vmatprep.mubr.bf16.mxu0 %v764_v4  ;;  %v5287_v17 = vld [vmem:[%s5244_s5 + $0x18] sm:$0xff]   ;;  %v5291_v18 = vld [vmem:[%s5244_s5 + $0x20] sm:$0xff]   ;;  %v5295_v19 = vld [vmem:[%s5244_s5 + $0x28] sm:$0xff]  }
  0x2b   : > { %v5299_v20 = vld [vmem:[%s5244_s5 + $0x30] sm:$0xff]   ;;  %v5303_v21 = vld [vmem:[%s5244_s5 + $0x38] sm:$0xff]  }
  0x2d   : > { %4479 = vmatpush3.bf16.msra.mxu0 %v4736_v2  ;;  %v4750_v6 = vld [vmem:[%s6191_s8] sm:$0xff]   ;;  %v4751_v7 = vld [vmem:[%s6191_s8 + $0x8] sm:$0xff]   ;;  %v4752_v8 = vld [vmem:[%s6191_s8 + $0x10] sm:$0xff]  }
  0x2e   : > { %4480 = vmatprep.subr.bf16.mxu0 %v4737_v3  ;;  %4506 = vmatprep.subr.bf16.mxu1 %v4750_v6  ;;  %v4753_v10 = vld [vmem:[%s6191_s8 + $0x18] sm:$0xff]   ;;  %v4754_v12 = vld [vmem:[%s6191_s8 + $0x20] sm:$0xff]   ;;  %v4755_v15 = vld [vmem:[%s6191_s8 + $0x28] sm:$0xff]  }
  0x2f   : > { %4507 = vmatpush3.bf16.msra.mxu1 %v4750_v6  ;;  %v4756_v22 = vld [vmem:[%s6191_s8 + $0x30] sm:$0xff]   ;;  %v4757_v23 = vld [vmem:[%s6191_s8 + $0x38] sm:$0xff]  }
  0x30   : > { %4508 = vmatprep.subr.bf16.mxu1 %v4751_v7 }
  0x31   : > { %4481 = vmatpush3.bf16.msra.mxu0 %v4737_v3 }
  0x32   : > { %4482 = vmatprep.subr.bf16.mxu0 %v4738_v5 }
  0x33   : > { %4509 = vmatpush3.bf16.msra.mxu1 %v4751_v7 }
  0x34   : > { %4510 = vmatprep.subr.bf16.mxu1 %v4752_v8 }
  0x35   : > { %4483 = vmatpush3.bf16.msra.mxu0 %v4738_v5 }
  0x36   : > { %4484 = vmatprep.subr.bf16.mxu0 %v4739_v9 }
  0x37   : > { %4511 = vmatpush3.bf16.msra.mxu1 %v4752_v8 }
  0x38   : > { %4512 = vmatprep.subr.bf16.mxu1 %v4753_v10 }
  0x39   : > { %4485 = vmatpush3.bf16.msra.mxu0 %v4739_v9 }
  0x3a   : > { %4486 = vmatprep.subr.bf16.mxu0 %v4740_v11 }
  0x3b   : > { %4513 = vmatpush3.bf16.msra.mxu1 %v4753_v10 }
  0x3c   : > { %4514 = vmatprep.subr.bf16.mxu1 %v4754_v12 }
  0x3d   : > { %4487 = vmatpush3.bf16.msra.mxu0 %v4740_v11 }
  0x3e   : > { %4488 = vmatprep.subr.bf16.mxu0 %v4741_v13 }
  0x3f   : > { %4515 = vmatpush3.bf16.msra.mxu1 %v4754_v12 }
  0x40   : > { %4516 = vmatprep.subr.bf16.mxu1 %v4755_v15 }
  0x41   : > { %4489 = vmatpush3.bf16.msra.mxu0 %v4741_v13 }
  0x42   : > { %4538 = vmatprep.subr.bf16.mxu0 %v4758_v24 }
  0x43   : > { %4517 = vmatpush3.bf16.msra.mxu1 %v4755_v15 }
  0x44   : > { %4491 = vmatmul.mubr.bf16.vlgmr.msra.gmra.mrb[0].mxu0 %v5278_v14  ;;  %4518 = vmatprep.subr.bf16.mxu1 %v4756_v22 }
  0x45   : > { %4494 = vmatprep.mubr.bf16.mxu0 %v5284_v16  ;;  %4539 = vmatpush3.bf16.msra.mxu0 %v4758_v24 }
  0x46   : > { %4540 = vmatprep.subr.bf16.mxu0 %v4759_v25 }
  0x47   : > { %4519 = vmatpush3.bf16.msra.mxu1 %v4756_v22 }
  0x48   : > { %4520 = vmatprep.subr.bf16.mxu1 %v4757_v23 }
  0x49   : > { %4541 = vmatpush3.bf16.msra.mxu0 %v4759_v25 }
  0x4a   : > { %4542 = vmatprep.subr.bf16.mxu0 %v4760_v26 }
  0x4b   : > { %4521 = vmatpush3.bf16.msra.mxu1 %v4757_v23 }
  0x4c   : > { %4495 = vmatmul.mubr.bf16.gmra.mrb[4].mxu0 %v5287_v17 }
  0x4d   : > { %4498 = vmatprep.mubr.bf16.mxu0 %v5291_v18  ;;  %4543 = vmatpush3.bf16.msra.mxu0 %v4760_v26 }
  0x4e   : > { %4544 = vmatprep.subr.bf16.mxu0 %v4761_v27 }
  0x51   : > { %4545 = vmatpush3.bf16.msra.mxu0 %v4761_v27 }
  0x52   : > { %4546 = vmatprep.subr.bf16.mxu0 %v4762_v28 }
  0x54   : > { %4499 = vmatmul.mubr.bf16.gmra.mrb[8].mxu0 %v5295_v19 }
  0x55   : > { %4502 = vmatprep.mubr.bf16.mxu0 %v5299_v20  ;;  %4547 = vmatpush3.bf16.msra.mxu0 %v4762_v28 }
  0x56   : > { %4548 = vmatprep.subr.bf16.mxu0 %v4763_v29 }
  0x59   : > { %4549 = vmatpush3.bf16.msra.mxu0 %v4763_v29 }
  0x5c   : > { %4503 = vmatmul.mubr.bf16.gmra.mrb[12].mxu0 %v5303_v21 }
 0x117   : > { %v4492_v31 = vpop.f32.mrb[0].mxu0 }
 0x118   : > { %v942_v32 = vadd.f32 %v4492_v31, %v3948_v30  ;;  %v933_v33 = vpop.f32.mrb[1].mxu0  ;;  %v4764_v31 = vld [vmem:[%s6193_s28 + $0x30] sm:$0xff]  }
 0x119   : > { %v934_v34 = vadd.f32 %v3948_v30, %v933_v33  ;;  %v4493_v35 = vpop.f32.mrb[2].mxu0  ;;  %4550 = vmatprep.subr.bf16.mxu0 %v4764_v31 }
 0x11a   : > { %v945_v36 = vadd.f32 %v4493_v35, %v3948_v30  ;;  %v936_v37 = vpop.f32.mrb[3].mxu0  ;;  %v998_v39 = vmax.f32 %v942_v32, 0.0  ;;  %4551 = vmatpush3.bf16.msra.mxu0 %v4764_v31  ;;  %v4765_v32 = vld [vmem:[%s6193_s28 + $0x38] sm:$0xff]  }
 0x11b   : > { %v937_v38 = vadd.f32 %v3948_v30, %v936_v37  ;;  %v996_v41 = vmax.f32 %v934_v34, 0.0  ;;  %4552 = vmatprep.subr.bf16.mxu0 %v4765_v32  ;;  %v1383_v37 = vunpack.c.h.bf16 %v5278_v14 }
 0x11c   : > { %v999_v40 = vmax.f32 %v945_v36, 0.0  ;;  %v1382_v36 = vunpack.c.l.bf16 %v5278_v14  ;;  %v1389_v14 = vunpack.c.h.bf16 %v5291_v18 }
 0x11d   : > { %v997_v42 = vmax.f32 %v937_v38, 0.0  ;;  %v5048_v38 = vmov 0  }
 0x11e   : > { %v1013_v43 = vpack.c.bf16 %v999_v40, %v998_v39  ;;  %4553 = vmatpush3.bf16.msra.mxu0 %v4765_v32  ;;  %4692 = vset.pattern.permute.xlu0 %v5048_v38  ;;  %v1384_v39 = vunpack.c.l.bf16 %v5284_v16  ;;  %v1385_v40 = vunpack.c.h.bf16 %v5284_v16  ;;  %v1392_v16 = vunpack.c.l.bf16 %v5299_v20 }
 0x11f   : > { %v4496_v44 = vpop.f32.mrb[4].mxu0  ;;  %v1012_v45 = vpack.c.bf16 %v997_v42, %v996_v41  ;;  %4703 = vset.pattern.permute.xlu1 %v5048_v38  ;;  %v1386_v41 = vunpack.c.l.bf16 %v5287_v17  ;;  %v1387_v42 = vunpack.c.h.bf16 %v5287_v17 }
 0x120   : > { %v958_v46 = vadd.f32 %v4496_v44, %v3948_v30  ;;  %v949_v47 = vpop.f32.mrb[5].mxu0  ;;  %v1388_v44 = vunpack.c.l.bf16 %v5291_v18 }
 0x121   : > { %v950_v48 = vadd.f32 %v3948_v30, %v949_v47  ;;  %v4497_v49 = vpop.f32.mrb[6].mxu0  ;;  %4522 = vmatprep.mubr.bf16.mxu1 %v1012_v45  ;;  %v4704_v45 = vpack.i.bf16 %v1385_v40, %v1384_v39  ;;  %v1390_v47 = vunpack.c.l.bf16 %v5295_v19 }
 0x122   : > { %v961_v50 = vadd.f32 %v4497_v49, %v3948_v30  ;;  %v952_v51 = vpop.f32.mrb[7].mxu0  ;;  %4523 = vmatmul.mubr.bf16.vlgmr.msra.gmra.mrb[0].mxu1 %v1013_v43  ;;  %v1002_v53 = vmax.f32 %v958_v46, 0.0  ;;  %v4698_v43 = vpack.i.bf16 %v1383_v37, %v1382_v36  ;;  %v4709_v46 = vpack.i.bf16 %v1387_v42, %v1386_v41 }
 0x123   : > { %v953_v52 = vadd.f32 %v3948_v30, %v952_v51  ;;  %v1000_v55 = vmax.f32 %v950_v48, 0.0  ;;  %4705 = vperm.xlu1 %4703, %v4704_v45   ;;  %v1391_v48 = vunpack.c.h.bf16 %v5295_v19  ;;  %v4714_v49 = vpack.i.bf16 %v1389_v14, %v1388_v44  ;;  %v3965_v19 = vld [vmem:[%s6195_s25] ss:$0 sm:$0xff]  ;;  %s755_s25 = sand.u32 1, %s5038_s2  }
 0x124   : > { %v1003_v54 = vmax.f32 %v961_v50, 0.0  ;;  %v1393_v50 = vunpack.c.h.bf16 %v5299_v20  ;;  %v1394_v51 = vunpack.c.l.bf16 %v5303_v21  ;;  %s3869_s8 = scalar_lea.sflag [#allocation5], %s755_s25 }
 0x125   : > { %v1001_v56 = vmax.f32 %v953_v52, 0.0  ;;  %v4719_v17 = vpack.i.bf16 %v1391_v48, %v1390_v47  ;;  %v1395_v52 = vunpack.c.h.bf16 %v5303_v21 }
 0x126   : > { %v1015_v57 = vpack.c.bf16 %v1003_v54, %v1002_v53  ;;  %v4724_v18 = vpack.i.bf16 %v1393_v50, %v1392_v16  ;;  %v4766_v50 = vld [vmem:[%s6196_s1 + $0x40] sm:$0xff]  }
 0x127   : > { %v1014_v58 = vpack.c.bf16 %v1001_v56, %v1000_v55  ;;  %v4500_v59 = vpop.f32.mrb[8].mxu0  ;;  %4710 = vperm.xlu1 %4703, %v4709_v46   ;;  %v4729_v53 = vpack.i.bf16 %v1395_v52, %v1394_v51  ;;  %v4768_v51 = vld [vmem:[%s6196_s1] sm:$0xff]   ;;  %4236 = vmatprep.subr.bf16.mxu1 %v4766_v50 }
 0x128   : > { %v974_v60 = vadd.f32 %v4500_v59, %v3948_v30  ;;  %v965_v61 = vpop.f32.mrb[9].mxu0  ;;  %v4769_v52 = vld [vmem:[%s6196_s1 + $0x80] sm:$0xff]   ;;  %4237 = vmatpush3.bf16.msra.mxu1 %v4768_v51 }
 0x129   : > { %v966_v62 = vadd.f32 %v3948_v30, %v965_v61  ;;  %v4501_v63 = vpop.f32.mrb[10].mxu0  ;;  %4526 = vmatprep.mubr.bf16.mxu1 %v1014_v58 }
 0x12a   : > { %v977_v0 = vadd.f32 %v4501_v63, %v3948_v30  ;;  %v968_v1 = vpop.f32.mrb[11].mxu0  ;;  %4527 = vmatmul.mubr.bf16.gmra.mrb[4].mxu1 %v1015_v57  ;;  %v1006_v3 = vmax.f32 %v974_v60, 0.0 }
 0x12b   : > { %v969_v2 = vadd.f32 %v3948_v30, %v968_v1  ;;  %v1004_v5 = vmax.f32 %v966_v62, 0.0  ;;  %4720 = vperm.xlu1 %4703, %v4719_v17   ;;  %v4767_v17 = vld [vmem:[%s6196_s1 + $0xc0] sm:$0xff]  }
 0x12c   : > { %v1007_v4 = vmax.f32 %v977_v0, 0.0  ;;  %4264 = vmatprep.subr.bf16.mxu0 %v4767_v17 }
 0x12d   : > { %v1005_v6 = vmax.f32 %v969_v2, 0.0 }
 0x12e   : > { %v1017_v7 = vpack.c.bf16 %v1007_v4, %v1006_v3 }
 0x12f   : > { %v1016_v8 = vpack.c.bf16 %v1005_v6, %v1004_v5  ;;  %v4504_v9 = vpop.f32.mrb[12].mxu0  ;;  %4730 = vperm.xlu1 %4703, %v4729_v53   ;;  %v4771_v53 = vld [vmem:[%s6196_s1 + $0xc8] sm:$0xff]  }
 0x130   : > { %v990_v10 = vadd.f32 %v4504_v9, %v3948_v30  ;;  %v981_v11 = vpop.f32.mrb[13].mxu0 }
 0x131   : > { %v982_v12 = vadd.f32 %v3948_v30, %v981_v11  ;;  %v4505_v13 = vpop.f32.mrb[14].mxu0  ;;  %4530 = vmatprep.mubr.bf16.mxu1 %v1016_v8 }
 0x132   : > { %v993_v15 = vadd.f32 %v4505_v13, %v3948_v30  ;;  %v984_v22 = vpop.f32.mrb[15].mxu0  ;;  %4531 = vmatmul.mubr.bf16.gmra.mrb[8].mxu1 %v1017_v7  ;;  %v1010_v24 = vmax.f32 %v990_v10, 0.0 }
 0x133   : > { %v985_v23 = vadd.f32 %v3948_v30, %v984_v22  ;;  %v1008_v26 = vmax.f32 %v982_v12, 0.0  ;;  %v4982_v30 = vld [vmem:[%s5244_s5] sm:$0xff]   ;;  %s6199_s5 = sld [smem:[#allocation21_spill]] }
 0x134   : > { %v1011_v25 = vmax.f32 %v993_v15, 0.0  ;;  %v1380_v33 = vunpack.c.l.bf16 %v4982_v30  ;;  %v1381_v34 = vunpack.c.h.bf16 %v4982_v30 }
 0x135   : > { %v1009_v27 = vmax.f32 %v985_v23, 0.0 }
 0x136   : > { %v1019_v28 = vpack.c.bf16 %v1011_v25, %v1010_v24  ;;  %v4693_v35 = vpack.i.bf16 %v1381_v34, %v1380_v33 }
 0x137   : > { %v1018_v29 = vpack.c.bf16 %v1009_v27, %v1008_v26 }
 0x138   : > { %4694 = vperm.xlu0 %4692, %v4693_v35  }
 0x139   : > { %4534 = vmatprep.mubr.bf16.mxu1 %v1018_v29 }
 0x13a   : > { %4535 = vmatmul.mubr.bf16.gmra.mrb[12].mxu1 %v1019_v28 }
 0x13c   : > { %4699 = vperm.xlu0 %4692, %v4698_v43  }
 0x140   : > { %4715 = vperm.xlu0 %4692, %v4714_v49  }
 0x144   : > { %4725 = vperm.xlu0 %4692, %v4724_v18   ;;  %v4770_v18 = vld [vmem:[%s6196_s1 + $0x48] sm:$0xff]  }
 0x145   : > { %4238 = vmatprep.subr.bf16.mxu1 %v4770_v18 }
 0x1f5   : > { %v4524_v54 = vpop.f32.mrb[0].mxu1 }
 0x1f6   : > { %v1134_v55 = vadd.f32 %v4524_v54, %v3965_v19  ;;  %v1125_v56 = vpop.f32.mrb[1].mxu1  ;;  %v4773_v54 = vld [vmem:[%s6196_s1 + $0x88] sm:$0xff]  }
 0x1f7   : > { %v1126_v20 = vadd.f32 %v3965_v19, %v1125_v56  ;;  %v4525_v57 = vpop.f32.mrb[2].mxu1  ;;  %v4775_v56 = vld [vmem:[%s6196_s1 + $0xd0] sm:$0xff]  }
 0x1f8   : > { %v1137_v58 = vadd.f32 %v4525_v57, %v3965_v19  ;;  %v1128_v59 = vpop.f32.mrb[3].mxu1  ;;  %v1190_v61 = vmax.f32 %v1134_v55, 0.0  ;;  %v4774_v55 = vld [vmem:[%s6196_s1 + $0x50] sm:$0xff]  }
 0x1f9   : > { %v1129_v60 = vadd.f32 %v3965_v19, %v1128_v59  ;;  %v1188_v62 = vmax.f32 %v1126_v20, 0.0  ;;  %v4776_v20 = vld [vmem:[%s6196_s1 + $0x10] sm:$0xff]   ;;  %v4779_v59 = vld [vmem:[%s6196_s1 + $0xd8] sm:$0xff]  }
 0x1fa   : > { %v1191_v21 = vmax.f32 %v1137_v58, 0.0  ;;  %v4777_v57 = vld [vmem:[%s6196_s1 + $0x90] sm:$0xff]   ;;  %v4778_v58 = vld [vmem:[%s6196_s1 + $0x58] sm:$0xff]  }
 0x1fb   : > { %v1189_v63 = vmax.f32 %v1129_v60, 0.0  ;;  %v4780_v60 = vld [vmem:[%s6196_s1 + $0x18] sm:$0xff]  }
 0x1fc   : > { %v1205_v0 = vpack.c.bf16 %v1191_v21, %v1190_v61  ;;  %v4781_v61 = vld [vmem:[%s6196_s1 + $0x98] sm:$0xff]   ;;  %v5049_v21 = vmov 0.0  }
 0x1fd   : > { %v1204_v1 = vpack.c.bf16 %v1189_v63, %v1188_v62  ;;  %v4528_v2 = vpop.f32.mrb[4].mxu1  ;;  %1562 = vst [vmem:[#allocation2] sm:$0xff] %v5049_v21  ;;  %1563 = vst [vmem:[#allocation2 + $0x48] sm:$0x7] %v5049_v21  ;;  %v4782_v62 = vld [vmem:[%s6196_s1 + $0x60] sm:$0xff]  }
 0x1fe   : > { %v1150_v3 = vadd.f32 %v4528_v2, %v3965_v19  ;;  %v1141_v4 = vpop.f32.mrb[5].mxu1  ;;  %2784 = vst [vmem:[#allocation3] sm:$0xff] %v5049_v21  ;;  %2785 = vst [vmem:[#allocation3 + $0x10] sm:$0x7] %v5049_v21  ;;  %v4783_v63 = vld [vmem:[%s6196_s1 + $0xe0] sm:$0xff]   ;;  %v4786_v2 = vld [vmem:[%s6196_s1 + $0x68] sm:$0xff]  }
 0x1ff   : > { %v1142_v5 = vadd.f32 %v3965_v19, %v1141_v4  ;;  %v4529_v6 = vpop.f32.mrb[6].mxu1  ;;  %4554 = vmatprep.mubr.bf16.mxu0 %v1204_v1  ;;  %v4785_v1 = vld [vmem:[%s6196_s1 + $0xa0] sm:$0xff]   ;;  %v4788_v4 = vld [vmem:[%s6196_s1 + $0x28] sm:$0xff]  }
 0x200   : > { %v1153_v7 = vadd.f32 %v4529_v6, %v3965_v19  ;;  %v1144_v8 = vpop.f32.mrb[7].mxu1  ;;  %4555 = vmatmul.mubr.bf16.vlgmr.msra.gmra.mrb[16].mxu0 %v1205_v0  ;;  %v1194_v10 = vmax.f32 %v1150_v3, 0.0  ;;  %v4784_v0 = vld [vmem:[%s6196_s1 + $0x20] sm:$0xff]   ;;  %v4787_v3 = vld [vmem:[%s6196_s1 + $0xe8] sm:$0xff]   ;;  %v4790_v6 = vld [vmem:[%s6196_s1 + $0x70] sm:$0xff]  }
 0x201   : > { %v1145_v9 = vadd.f32 %v3965_v19, %v1144_v8  ;;  %v1192_v12 = vmax.f32 %v1142_v5, 0.0  ;;  %4265 = vmatpush3.bf16.msra.mxu0 %v4769_v52  ;;  %v4789_v5 = vld [vmem:[%s6196_s1 + $0xa8] sm:$0xff]   ;;  %v4792_v8 = vld [vmem:[%s6196_s1 + $0x30] sm:$0xff]  }
 0x202   : > { %v1195_v11 = vmax.f32 %v1153_v7, 0.0  ;;  %4266 = vmatprep.subr.bf16.mxu0 %v4771_v53  ;;  %v4791_v7 = vld [vmem:[%s6196_s1 + $0xf0] sm:$0xff]  }
 0x203   : > { %v1193_v13 = vmax.f32 %v1145_v9, 0.0  ;;  %v4793_v9 = vld [vmem:[%s6196_s1 + $0xb0] sm:$0xff]  }
 0x204   : > { %v1207_v15 = vpack.c.bf16 %v1195_v11, %v1194_v10  ;;  %v4794_v10 = vld [vmem:[%s6196_s1 + $0x78] sm:$0xff]  }
 0x205   : > { %v1206_v22 = vpack.c.bf16 %v1193_v13, %v1192_v12  ;;  %v4532_v23 = vpop.f32.mrb[8].mxu1  ;;  %4267 = vmatpush3.bf16.msra.mxu0 %v4773_v54  ;;  %v4795_v11 = vld [vmem:[%s6196_s1 + $0xf8] sm:$0xff]  }
 0x206   : > { %v1166_v24 = vadd.f32 %v4532_v23, %v3965_v19  ;;  %v1157_v25 = vpop.f32.mrb[9].mxu1  ;;  %4268 = vmatprep.subr.bf16.mxu0 %v4775_v56  ;;  %v4796_v12 = vld [vmem:[%s6196_s1 + $0x38] sm:$0xff]   ;;  %v4706_v23 = vpop.permute.xlu1 %4705 }
 0x207   : > { %v1158_v26 = vadd.f32 %v3965_v19, %v1157_v25  ;;  %v4533_v27 = vpop.f32.mrb[10].mxu1  ;;  %4558 = vmatprep.mubr.bf16.mxu0 %v1206_v22  ;;  %v4797_v13 = vld [vmem:[%s6196_s1 + $0xb8] sm:$0xff]   ;;  %v5463_v22 = vld [vmem:[%s6196_s1 + $0x180] sm:$0xff]  }
 0x208   : > { %v1169_v28 = vadd.f32 %v4533_v27, %v3965_v19  ;;  %v1160_v29 = vpop.f32.mrb[11].mxu1  ;;  %4559 = vmatmul.mubr.bf16.gmra.mrb[20].mxu0 %v1207_v15  ;;  %v1198_v32 = vmax.f32 %v1166_v24, 0.0  ;;  %v4798_v15 = vld [vmem:[%s6196_s1 + $0x140] sm:$0xff]   ;;  %v4695_v24 = vpop.permute.xlu0 %4694 }
 0x209   : > { %v1161_v31 = vadd.f32 %v3965_v19, %v1160_v29  ;;  %v1196_v33 = vmax.f32 %v1158_v26, 0.0  ;;  %4269 = vmatpush3.bf16.msra.mxu0 %v4777_v57 }
 0x20a   : > { %v1199_v30 = vmax.f32 %v1169_v28, 0.0  ;;  %4270 = vmatprep.subr.bf16.mxu0 %v4779_v59  ;;  %v4711_v25 = vpop.permute.xlu1 %4710 }
 0x20b   : > { %v1197_v34 = vmax.f32 %v1161_v31, 0.0  ;;  %v4713_v17 = vunpack.i.h.bf16 %v4711_v25  ;;  %v4712_v51 = vunpack.i.l.bf16 %v4711_v25 }
 0x20c   : > { %v1209_v35 = vpack.c.bf16 %v1199_v30, %v1198_v32  ;;  %v4700_v27 = vpop.permute.xlu0 %4699  ;;  %v4697_v30 = vunpack.i.h.bf16 %v4695_v24 }
 0x20d   : > { %v1208_v36 = vpack.c.bf16 %v1197_v34, %v1196_v33  ;;  %v4536_v37 = vpop.f32.mrb[12].mxu1  ;;  %4271 = vmatpush3.bf16.msra.mxu0 %v4781_v61  ;;  %v4701_v33 = vunpack.i.l.bf16 %v4700_v27 }
 0x20e   : > { %v1182_v39 = vadd.f32 %v4536_v37, %v3965_v19  ;;  %v1173_v40 = vpop.f32.mrb[13].mxu1  ;;  %4272 = vmatprep.subr.bf16.mxu0 %v4783_v63  ;;  %v4721_v32 = vpop.permute.xlu1 %4720  ;;  %v4702_v37 = vunpack.i.h.bf16 %v4700_v27 }
 0x20f   : > { %v1174_v41 = vadd.f32 %v3965_v19, %v1173_v40  ;;  %v4537_v42 = vpop.f32.mrb[14].mxu1  ;;  %4562 = vmatprep.mubr.bf16.mxu0 %v1208_v36  ;;  %v4696_v36 = vunpack.i.l.bf16 %v4695_v24  ;;  %v4722_v52 = vunpack.i.l.bf16 %v4721_v32  ;;  %v4723_v54 = vunpack.i.h.bf16 %v4721_v32 }
 0x210   : > { %v1185_v43 = vadd.f32 %v4537_v42, %v3965_v19  ;;  %v1176_v44 = vpop.f32.mrb[15].mxu1  ;;  %4563 = vmatmul.mubr.bf16.gmra.mrb[24].mxu0 %v1209_v35  ;;  %v1202_v14 = vmax.f32 %v1182_v39, 0.0  ;;  %v4716_v34 = vpop.permute.xlu0 %4715  ;;  %v3983_v35 = vld [vmem:[%s6197_s9] ss:$0 sm:$0xff] }
 0x211   : > { %v1177_v45 = vadd.f32 %v3965_v19, %v1176_v44  ;;  %v1200_v47 = vmax.f32 %v1174_v41, 0.0  ;;  %v4772_v19 = vld [vmem:[%s6196_s1 + $0x8] sm:$0xff]   ;;  %4273 = vmatpush3.bf16.msra.mxu0 %v4785_v1  ;;  %v5472_v39 = vld [vmem:[%s6198_s27] ss:$0 sm:$0xff]  ;;  %v1484_v41 = vmul.f32 %v4697_v30, %v3983_v35  ;;  %v1485_v42 = vmul.f32 %v4701_v33, %v3983_v35  ;;  %s4184_s27 = sshll.u32 %s5203_s7, 6  ;;  %s5051_s7 = smov [#allocation4]  }
 0x212   : > { %v1203_v46 = vmax.f32 %v1185_v43, 0.0  ;;  %4239 = vmatpush3.bf16.msra.mxu1 %v4772_v19  ;;  %4274 = vmatprep.subr.bf16.mxu0 %v4787_v3  ;;  %v4708_v44 = vunpack.i.h.bf16 %v4706_v23  ;;  %v4717_v56 = vunpack.i.l.bf16 %v4716_v34  ;;  %v1490_v1 = vmul.f32 %v4713_v17, %v3983_v35  ;;  %s6088_s9 = scalar_lea.hbm %s6200_s0, %s4184_s27 }
 0x213   : > { %v1201_v48 = vmax.f32 %v1177_v45, 0.0  ;;  %4240 = vmatprep.subr.bf16.mxu1 %v4774_v55  ;;  %v4718_v55 = vunpack.i.h.bf16 %v4716_v34  ;;  %v1493_v3 = vmul.f32 %v4722_v52, %v3983_v35 }
 0x214   : > { %v1211_v49 = vpack.c.bf16 %v1203_v46, %v1202_v14  ;;  %v1483_v14 = vmul.f32 %v4696_v36, %v3983_v35  ;;  %v1486_v46 = vmul.f32 %v4702_v37, %v3983_v35  ;;  %v4726_v53 = vpop.permute.xlu0 %4725  ;;  %v1488_v57 = vmul.f32 %v4708_v44, %v3983_v35 }
 0x215   : > { %v1210_v16 = vpack.c.bf16 %v1201_v48, %v1200_v47  ;;  %4275 = vmatpush3.bf16.msra.mxu0 %v4789_v5  ;;  %v4707_v47 = vunpack.i.l.bf16 %v4706_v23  ;;  %v4727_v63 = vunpack.i.l.bf16 %v4726_v53  ;;  %v1494_v5 = vmul.f32 %v4723_v54, %v3983_v35 }
 0x216   : > { %4241 = vmatpush3.bf16.msra.mxu1 %v4776_v20  ;;  %4276 = vmatprep.subr.bf16.mxu0 %v4791_v7  ;;  %v1491_v7 = vmul.f32 %v4717_v56, %v3983_v35 }
 0x217   : > { %4566 = vmatprep.mubr.bf16.mxu0 %v1210_v16  ;;  %4242 = vmatprep.subr.bf16.mxu1 %v4778_v58  ;;  %v4731_v16 = vpop.permute.xlu1 %4730  ;;  %v1487_v61 = vmul.f32 %v4707_v47, %v3983_v35  ;;  %v1495_v24 = vmul.f32 %v4727_v63, %v3983_v35 }
 0x218   : > { %4567 = vmatmul.mubr.bf16.gmra.mrb[28].mxu0 %v1211_v49  ;;  %v4733_v58 = vunpack.i.h.bf16 %v4731_v16  ;;  %v4732_v59 = vunpack.i.l.bf16 %v4731_v16 }
 0x219   : > { %4277 = vmatpush3.bf16.msra.mxu0 %v4793_v9 }
 0x21a   : > { %4243 = vmatpush3.bf16.msra.mxu1 %v4780_v60  ;;  %4278 = vmatprep.subr.bf16.mxu0 %v4795_v11  ;;  %v5481_v60 = vld [vmem:[%s6199_s5] ss:$0 sm:$0xff]  ;;  %v1497_v11 = vmul.f32 %v4732_v59, %v3983_v35 }
 0x21b   : > { %4244 = vmatprep.subr.bf16.mxu1 %v4782_v62  ;;  %v4728_v62 = vunpack.i.h.bf16 %v4726_v53 }
 0x21d   : > { %4279 = vmatpush3.bf16.msra.mxu0 %v4797_v13  ;;  %v1496_v23 = vmul.f32 %v4728_v62, %v3983_v35 }
 0x21e   : > { %4245 = vmatpush3.bf16.msra.mxu1 %v4784_v0  ;;  %4570 = vmatprep.subr.bf16.mxu0 %v5463_v22 }
 0x21f   : > { %4246 = vmatprep.subr.bf16.mxu1 %v4786_v2  ;;  %v1489_v2 = vmul.f32 %v4712_v51, %v3983_v35 }
 0x222   : > { %4247 = vmatpush3.bf16.msra.mxu1 %v4788_v4 }
 0x223   : > { %4248 = vmatprep.subr.bf16.mxu1 %v4790_v6  ;;  %v1492_v6 = vmul.f32 %v4718_v55, %v3983_v35 }
 0x226   : > { %4249 = vmatpush3.bf16.msra.mxu1 %v4792_v8 }
 0x227   : > { %4250 = vmatprep.subr.bf16.mxu1 %v4794_v10  ;;  %v1498_v10 = vmul.f32 %v4733_v58, %v3983_v35 }
 0x22a   : > { %4251 = vmatpush3.bf16.msra.mxu1 %v4796_v12 }
 0x22b   : > { %4292 = vmatprep.subr.bf16.mxu1 %v4798_v15 }
 0x2d3   : > { %v4556_v26 = vpop.f32.mrb[16].mxu0 }
 0x2d4   : > { %v1317_v28 = vpop.f32.mrb[17].mxu0  ;;  %v1326_v43 = vadd.f32 %v4556_v26, %v5472_v39 }
 0x2d5   : > { %v4557_v29 = vpop.f32.mrb[18].mxu0  ;;  %v1318_v48 = vadd.f32 %v5472_v39, %v1317_v28 }
 0x2d6   : > { %v1320_v31 = vpop.f32.mrb[19].mxu0  ;;  %v1329_v50 = vadd.f32 %v4557_v29, %v5472_v39  ;;  %v1501_v20 = vadd.f32 %v1485_v42, %v1326_v43 }
 0x2d7   : > { %v1321_v19 = vadd.f32 %v5472_v39, %v1320_v31  ;;  %v1499_v21 = vadd.f32 %v1483_v14, %v1318_v48 }
 0x2d8   : > { %v1502_v0 = vadd.f32 %v1486_v46, %v1329_v50  ;;  %v1524_v9 = vadd.f32 %v5481_v60, %v1501_v20 }
 0x2d9   : > { %v1500_v4 = vadd.f32 %v1484_v41, %v1321_v19  ;;  %v1522_v15 = vadd.f32 %v5481_v60, %v1499_v21 }
 0x2da   : > { %v1525_v27 = vadd.f32 %v5481_v60, %v1502_v0  ;;  %v1540_v37 = vmax.f32 %v1524_v9, 0.0 }
 0x2db   : > { %v4560_v40 = vpop.f32.mrb[20].mxu0  ;;  %v1523_v30 = vadd.f32 %v5481_v60, %v1500_v4  ;;  %v1538_v43 = vmax.f32 %v1522_v15, 0.0 }
 0x2dc   : > { %v1333_v45 = vpop.f32.mrb[21].mxu0  ;;  %v1342_v28 = vadd.f32 %v4560_v40, %v5472_v39  ;;  %v1541_v46 = vmax.f32 %v1525_v27, 0.0 }
 0x2dd   : > { %v4561_v49 = vpop.f32.mrb[22].mxu0  ;;  %v1334_v33 = vadd.f32 %v5472_v39, %v1333_v45  ;;  %v1539_v16 = vmax.f32 %v1523_v30, 0.0 }
 0x2de   : > { %v1336_v18 = vpop.f32.mrb[23].mxu0  ;;  %v1345_v35 = vadd.f32 %v4561_v49, %v5472_v39  ;;  %v1505_v47 = vadd.f32 %v1489_v2, %v1342_v28 }
 0x2df   : > { %v1337_v40 = vadd.f32 %v5472_v39, %v1336_v18  ;;  %v1503_v50 = vadd.f32 %v1487_v61, %v1334_v33 }
 0x2e0   : > { %v1506_v52 = vadd.f32 %v1490_v1, %v1345_v35  ;;  %v1528_v21 = vadd.f32 %v5481_v60, %v1505_v47 }
 0x2e1   : > { %v1504_v55 = vadd.f32 %v1488_v57, %v1337_v40  ;;  %v1526_v1 = vadd.f32 %v5481_v60, %v1503_v50 }
 0x2e2   : > { %v1529_v4 = vadd.f32 %v5481_v60, %v1506_v52 }
 0x2e3   : > { %v4564_v8 = vpop.f32.mrb[24].mxu0  ;;  %v1542_v15 = vmax.f32 %v1526_v1, 0.0  ;;  %v4804_v1 = vld [vmem:[%s6196_s1 + $0x150] sm:$0xff]  }
 0x2e4   : > { %v1358_v12 = vadd.f32 %v4564_v8, %v5472_v39  ;;  %v1349_v13 = vpop.f32.mrb[25].mxu0 }
 0x2e5   : > { %v1350_v25 = vadd.f32 %v5472_v39, %v1349_v13  ;;  %v4565_v26 = vpop.f32.mrb[26].mxu0 }
 0x2e6   : > { %v1509_v29 = vadd.f32 %v1493_v3, %v1358_v12  ;;  %v1361_v31 = vadd.f32 %v4565_v26, %v5472_v39  ;;  %v1352_v32 = vpop.f32.mrb[27].mxu0 }
 0x2e7   : > { %v1507_v34 = vadd.f32 %v1491_v7, %v1350_v25  ;;  %v1353_v36 = vadd.f32 %v5472_v39, %v1352_v32  ;;  %v1527_v7 = vadd.f32 %v5481_v60, %v1504_v55  ;;  %v1545_v25 = vmax.f32 %v1529_v4, 0.0 }
 0x2e8   : > { %v1532_v41 = vadd.f32 %v5481_v60, %v1509_v29  ;;  %v1510_v42 = vadd.f32 %v1494_v5, %v1361_v31 }
 0x2e9   : > { %v1530_v44 = vadd.f32 %v5481_v60, %v1507_v34  ;;  %v1508_v14 = vadd.f32 %v1492_v6, %v1353_v36  ;;  %v1543_v28 = vmax.f32 %v1527_v7, 0.0  ;;  %v4808_v7 = vld [vmem:[%s6196_s1 + $0x198] sm:$0xff]  }
 0x2ea   : > { %v1548_v48 = vmax.f32 %v1532_v41, 0.0  ;;  %v1533_v45 = vadd.f32 %v5481_v60, %v1510_v42 }
 0x2eb   : > { %v1546_v17 = vmax.f32 %v1530_v44, 0.0  ;;  %v1531_v51 = vadd.f32 %v5481_v60, %v1508_v14  ;;  %v4568_v49 = vpop.f32.mrb[28].mxu0 }
 0x2ec   : > { %v1556_v53 = vmax.f32 %v1540_v37, %v1548_v48  ;;  %v1549_v19 = vmax.f32 %v1533_v45, 0.0  ;;  %v1374_v54 = vadd.f32 %v4568_v49, %v5472_v39  ;;  %v1365_v18 = vpop.f32.mrb[29].mxu0 }
 0x2ed   : > { %v1554_v56 = vmax.f32 %v1538_v43, %v1546_v17  ;;  %v1547_v20 = vmax.f32 %v1531_v51, 0.0  ;;  %v1366_v58 = vadd.f32 %v5472_v39, %v1365_v18  ;;  %v4569_v59 = vpop.f32.mrb[30].mxu0 }
 0x2ee   : > { %1566 = vst [vmem:[#allocation2 + $0x18] sm:$0xff] %v1556_v53  ;;  %v1557_v61 = vmax.f32 %v1541_v46, %v1549_v19  ;;  %v1513_v62 = vadd.f32 %v1497_v11, %v1374_v54  ;;  %v1377_v63 = vadd.f32 %v4569_v59, %v5472_v39  ;;  %v1368_v0 = vpop.f32.mrb[31].mxu0  ;;  %v1544_v11 = vmax.f32 %v1528_v21, 0.0  ;;  %v4800_v53 = vld [vmem:[%s6196_s1 + $0x100] sm:$0xff]  }
 0x2ef   : > { %1564 = vst [vmem:[#allocation2 + $0x8] sm:$0xff] %v1554_v56  ;;  %v1555_v2 = vmax.f32 %v1539_v16, %v1547_v20  ;;  %v1511_v3 = vadd.f32 %v1495_v24, %v1366_v58  ;;  %v1369_v57 = vadd.f32 %v5472_v39, %v1368_v0  ;;  %v4801_v56 = vld [vmem:[%s6196_s1 + $0x148] sm:$0xff]  }
 0x2f0   : > { %1567 = vst [vmem:[#allocation2 + $0x20] sm:$0xff] %v1557_v61  ;;  %v1536_v5 = vadd.f32 %v5481_v60, %v1513_v62  ;;  %v1514_v6 = vadd.f32 %v1498_v10, %v1377_v63  ;;  %v4802_v20 = vld [vmem:[%s6196_s1 + $0x188] sm:$0xff]  }
 0x2f1   : > { %1565 = vst [vmem:[#allocation2 + $0x10] sm:$0xff] %v1555_v2  ;;  %v1534_v8 = vadd.f32 %v5481_v60, %v1511_v3  ;;  %v1512_v9 = vadd.f32 %v1496_v23, %v1369_v57  ;;  %v4803_v62 = vld [vmem:[%s6196_s1 + $0x108] sm:$0xff]   ;;  %v4805_v2 = vld [vmem:[%s6196_s1 + $0x190] sm:$0xff]  }
 0x2f2   : > { %v1552_v12 = vmax.f32 %v1536_v5, 0.0  ;;  %v1537_v13 = vadd.f32 %v5481_v60, %v1514_v6  ;;  %v4807_v6 = vld [vmem:[%s6196_s1 + $0x158] sm:$0xff]  }
 0x2f3   : > { %v1550_v24 = vmax.f32 %v1534_v8, 0.0  ;;  %v1535_v39 = vadd.f32 %v5481_v60, %v1512_v9  ;;  %v4809_v8 = vld [vmem:[%s6196_s1 + $0x118] sm:$0xff]   ;;  %v4810_v9 = vld [vmem:[%s6196_s1 + $0x160] sm:$0xff]  }
 0x2f4   : > { %v1560_v26 = vmax.f32 %v1544_v11, %v1552_v12  ;;  %v1553_v27 = vmax.f32 %v1537_v13, 0.0  ;;  %v4811_v11 = vld [vmem:[%s6196_s1 + $0x1a0] sm:$0xff]   ;;  %v4813_v13 = vld [vmem:[%s6196_s1 + $0x168] sm:$0xff]  }
 0x2f5   : > { %v1558_v29 = vmax.f32 %v1542_v15, %v1550_v24  ;;  %v1551_v10 = vmax.f32 %v1535_v39, 0.0  ;;  %v4812_v12 = vld [vmem:[%s6196_s1 + $0x120] sm:$0xff]   ;;  %v4814_v15 = vld [vmem:[%s6196_s1 + $0x1a8] sm:$0xff]   ;;  %v4816_v39 = vld [vmem:[%s6196_s1 + $0x170] sm:$0xff]  }
 0x2f6   : > { %1570 = vst [vmem:[#allocation2 + $0x38] sm:$0xff] %v1560_v26  ;;  %v1561_v31 = vmax.f32 %v1545_v25, %v1553_v27  ;;  %v4815_v24 = vld [vmem:[%s6196_s1 + $0x128] sm:$0xff]   ;;  %v4817_v25 = vld [vmem:[%s6196_s1 + $0x1b0] sm:$0xff]   ;;  %v4819_v27 = vld [vmem:[%s6196_s1 + $0x178] sm:$0xff]  }
 0x2f7   : > { %1568 = vst [vmem:[#allocation2 + $0x28] sm:$0xff] %v1558_v29  ;;  %v1559_v32 = vmax.f32 %v1543_v28, %v1551_v10  ;;  %v4818_v26 = vld [vmem:[%s6196_s1 + $0x130] sm:$0xff]   ;;  %v4820_v28 = vld [vmem:[%s6196_s1 + $0x1b8] sm:$0xff]  }
 0x2f8   : > { %1571 = vst [vmem:[#allocation2 + $0x40] sm:$0xff] %v1561_v31  ;;  %v1577_v23 = vld [vmem:[#allocation2 + $0x6] ss:$8 sm:$0xf] }
 0x2f9   : > { %1569 = vst [vmem:[#allocation2 + $0x30] sm:$0xff] %v1559_v32  ;;  %v1585_v30 = vld [vmem:[#allocation2 + $0x8] ss:$8 sm:$0xf] }
 0x2fa   : > { %v1593_v33 = vld [vmem:[#allocation2 + $0xa] ss:$8 sm:$0xf]  ;;  %v1573_v34 = vld [vmem:[#allocation2 + $0x5] ss:$8 sm:$0xf] }
 0x2fb   : > { %v1581_v35 = vld [vmem:[#allocation2 + $0x7] ss:$8 sm:$0xf]  ;;  %v1589_v60 = vld [vmem:[#allocation2 + $0x9] ss:$8 sm:$0xf] }
 0x2fc   : > { %v1601_v44 = vld [vmem:[#allocation2 + $0xc] ss:$8 sm:$0xf]  ;;  %v1609_v14 = vld [vmem:[#allocation2 + $0xe] ss:$8 sm:$0xf] }
 0x2fd   : > { %v1597_v63 = vld [vmem:[#allocation2 + $0xb] ss:$8 sm:$0xf]  ;;  %v1605_v0 = vld [vmem:[#allocation2 + $0xd] ss:$8 sm:$0xf] }
 0x2fe   : > { %v4821_v31 = vld [vmem:[%s6196_s1 + $0x138] sm:$0xff]  }
 0x300   : > { %v1578_v36 = vld [vmem:[#allocation2 + $0x6] ss:$8 sm:$0xf0]  ;;  %v1586_v37 = vld [vmem:[#allocation2 + $0x8] ss:$8 sm:$0xf0] }
 0x301   : > { %v1579_v41 = vor.u32 %v1578_v36, %v1577_v23  ;;  %v1587_v42 = vor.u32 %v1586_v37, %v1585_v30  ;;  %v1594_v43 = vld [vmem:[#allocation2 + $0xa] ss:$8 sm:$0xf0]  ;;  %v1574_v40 = vld [vmem:[#allocation2 + $0x5] ss:$8 sm:$0xf0] }
 0x302   : > { %v1595_v46 = vor.u32 %v1594_v43, %v1593_v33  ;;  %v1575_v47 = vor.u32 %v1574_v40, %v1573_v34  ;;  %v1582_v48 = vld [vmem:[#allocation2 + $0x7] ss:$8 sm:$0xf0]  ;;  %v1590_v45 = vld [vmem:[#allocation2 + $0x9] ss:$8 sm:$0xf0] }
 0x303   : > { %v1625_v16 = vpack.c.bf16 %v1587_v42, %v1579_v41  ;;  %v1583_v50 = vor.u32 %v1582_v48, %v1581_v35  ;;  %v1591_v17 = vor.u32 %v1590_v45, %v1589_v60  ;;  %v1602_v51 = vld [vmem:[#allocation2 + $0xc] ss:$8 sm:$0xf0]  ;;  %v1610_v49 = vld [vmem:[#allocation2 + $0xe] ss:$8 sm:$0xf0] }
 0x304   : > { %v5511_v52 = vpack.c.bf16 %v1595_v46, %v1587_v42  ;;  %v1603_v19 = vor.u32 %v1602_v51, %v1601_v44  ;;  %v5516_v54 = vor.u32 %v1610_v49, %v1609_v14  ;;  %v1598_v58 = vld [vmem:[#allocation2 + $0xb] ss:$8 sm:$0xf0]  ;;  %v1606_v59 = vld [vmem:[#allocation2 + $0xd] ss:$8 sm:$0xf0] }
 0x305   : > { %2122 = vmatprep.mubr.bf16.mxu1 %v1625_v16  ;;  %v1624_v18 = vpack.c.bf16 %v1583_v50, %v1575_v47  ;;  %v1626_v55 = vpack.c.bf16 %v1591_v17, %v1583_v50  ;;  %v1599_v3 = vor.u32 %v1598_v58, %v1597_v63  ;;  %v5539_v57 = vor.u32 %v1606_v59, %v1605_v0  ;;  %v1614_v29 = vld [vmem:[#allocation2 + $0xf] ss:$8 sm:$0xf0]  ;;  %v1622_v10 = vld [vmem:[#allocation2 + $0x11] ss:$8 sm:$0xf0] }
 0x306   : > { %2171 = vmatprep.mubr.bf16.mxu0 %v5511_v52  ;;  %v1629_v21 = vpack.c.bf16 %v1603_v19, %v1595_v46  ;;  %v5526_v61 = vpack.c.bf16 %v5516_v54, %v1603_v19  ;;  %v1618_v32 = vld [vmem:[#allocation2 + $0x10] ss:$8 sm:$0xf0]  ;;  %v1613_v23 = vld [vmem:[#allocation2 + $0xf] ss:$8 sm:$0xf] }
 0x307   : > { %2123 = vmatmul.mubr.bf16.vlgmr.msra.gmra.mrb[16].mxu1 %v1624_v18  ;;  %2172 = vmatmul.mubr.bf16.vlgmr.msra.gmra.mrb[32].mxu0 %v1626_v55  ;;  %v1628_v4 = vpack.c.bf16 %v1599_v3, %v1591_v17  ;;  %v1630_v5 = vpack.c.bf16 %v5539_v57, %v1599_v3  ;;  %v1621_v30 = vld [vmem:[#allocation2 + $0x11] ss:$8 sm:$0xf]  ;;  %v1615_v33 = vor.u32 %v1614_v29, %v1613_v23  ;;  %v1617_v36 = vld [vmem:[#allocation2 + $0x10] ss:$8 sm:$0xf] }
 0x308   : > { %4293 = vmatpush3.bf16.msra.mxu1 %v4800_v53  ;;  %4571 = vmatpush3.bf16.msra.mxu0 %v5463_v22  ;;  %v4806_v22 = vld [vmem:[%s6196_s1 + $0x110] sm:$0xff]   ;;  %v1623_v34 = vor.u32 %v1622_v10, %v1621_v30  ;;  %v1619_v37 = vor.u32 %v1618_v32, %v1617_v36  ;;  %v4824_v42 = vld [vmem:[%s6141_s11 + $0x4] ss:$8 sps:$4 sm:$0xff]   ;;  %v4822_v43 = vld [vmem:[%s6141_s11] ss:$8 sps:$4 sm:$0xff]   ;;  %s3945_s1 = sshll.u32 %s755_s25, 2 }
 0x309   : > { %2130 = vmatprep.mubr.bf16.mxu1 %v1629_v21  ;;  %2179 = vmatprep.mubr.bf16.mxu0 %v5526_v61  ;;  %v1632_v41 = vpack.c.bf16 %v1615_v33, %v5539_v57  ;;  %v4827_v40 = vld [vmem:[%s6141_s11 + $0x14] ss:$8 sps:$4 sm:$0xff]   ;;  %v4825_v44 = vld [vmem:[%s6141_s11 + $0x10] ss:$8 sps:$4 sm:$0xff]   ;;  %v4830_v14 = vld [vmem:[%s6141_s11 + $0x24] ss:$8 sps:$4 sm:$0xff]  }
 0x30a   : > { %4294 = vmatprep.subr.bf16.mxu1 %v4801_v56  ;;  %4572 = vmatprep.subr.bf16.mxu0 %v4802_v20  ;;  %v1634_v35 = vpack.c.bf16 %v1623_v34, %v1615_v33  ;;  %v1633_v60 = vpack.c.bf16 %v1619_v37, %v5516_v54  ;;  %v4828_v46 = vld [vmem:[%s6141_s11 + $0x20] ss:$8 sps:$4 sm:$0xff]   ;;  %v4833_v47 = vld [vmem:[%s6141_s11 + $0x34] ss:$8 sps:$4 sm:$0xff]   ;;  %v4831_v48 = vld [vmem:[%s6141_s11 + $0x30] ss:$8 sps:$4 sm:$0xff]  }
 0x30b   : > { %v4836_v45 = vld [vmem:[%s6141_s11 + $0x44] ss:$8 sps:$4 sm:$0xff]   ;;  %v4834_v16 = vld [vmem:[%s6141_s11 + $0x40] ss:$8 sps:$4 sm:$0xff]   ;;  %v4839_v50 = vld [vmem:[%s6141_s11 + $0x54] ss:$8 sps:$4 sm:$0xff]  }
 0x30c   : > { %4295 = vmatpush3.bf16.msra.mxu1 %v4803_v62  ;;  %4573 = vmatpush3.bf16.msra.mxu0 %v4802_v20  ;;  %v4837_v17 = vld [vmem:[%s6141_s11 + $0x50] ss:$8 sps:$4 sm:$0xff]   ;;  %v4842_v51 = vld [vmem:[%s6141_s11 + $0x64] ss:$8 sps:$4 sm:$0xff]   ;;  %v4840_v49 = vld [vmem:[%s6141_s11 + $0x60] ss:$8 sps:$4 sm:$0xff]  }
 0x30d   : > { %4296 = vmatprep.subr.bf16.mxu1 %v4804_v1  ;;  %4574 = vmatprep.subr.bf16.mxu0 %v4805_v2  ;;  %v4845_v53 = vld [vmem:[%s6141_s11 + $0x74] ss:$8 sps:$4 sm:$0xff]   ;;  %v4843_v19 = vld [vmem:[%s6141_s11 + $0x70] ss:$8 sps:$4 sm:$0xff]   ;;  %v5644_v54 = vld [vmem:[%s6145_s15] sm:$0xff]   ;;  %s757_s29 = scalar_lea.vmem [#allocation4], %s3945_s1 }
 0x30e   : > { %v4854_v18 = vld [vmem:[%s6143_s13 + $0x40] sm:$0xff]   ;;  %v4856_v56 = vld [vmem:[%s6143_s13 + $0x48] sm:$0xff]   ;;  %v4858_v58 = vld [vmem:[%s6143_s13 + $0x50] sm:$0xff]   ;;  %s3882_s26 = sshll.u32 %s757_s29, 4  ;;  %s4988_s1 = sshll.u32 %s5051_s7, 4  ;;  %s6090_s26 = int_to_ptr.vmem [resolvable:$true] %s3882_s26  ;;  %s4989_s1 = int_to_ptr.vmem [resolvable:$false] %s4988_s1 }
 0x30f   : > { %2131 = vmatmul.mubr.bf16.gmra.mrb[20].mxu1 %v1628_v4  ;;  %2180 = vmatmul.mubr.bf16.gmra.mrb[36].mxu0 %v1630_v5  ;;  %v4855_v55 = vld [vmem:[%s6143_s13] sm:$0xff]   ;;  %v4857_v20 = vld [vmem:[%s6143_s13 + $0x8] sm:$0xff]   ;;  %v4859_v59 = vld [vmem:[%s6143_s13 + $0x10] sm:$0xff]   ;;  %s4984_s3 = scalar_lea.vmem %s6090_s26, 64  ;;  %s4990_s6 = scalar_lea.vmem %s4989_s1, 128 }
 0x310   : > { %4297 = vmatpush3.bf16.msra.mxu1 %v4806_v22  ;;  %4575 = vmatpush3.bf16.msra.mxu0 %v4805_v2  ;;  %v4861_v62 = vld [vmem:[%s6143_s13 + $0x18] sm:$0xff]   ;;  %v4862_v63 = vld [vmem:[%s6143_s13 + $0x60] sm:$0xff]   ;;  %v4864_v1 = vld [vmem:[%s6143_s13 + $0x68] sm:$0xff]   ;;  %p4985_p11 = scmp.ne.s32.totalorder %s6090_s26, %s4984_s3  ;;  %p4991_p0 = scmp.lt.s32.totalorder %s6090_s26, %s4989_s1 }
 0x311   : > { %2220 = vmatprep.mubr.bf16.mxu1 %v1629_v21  ;;  %4586 = vmatprep.mubr.bf16.mxu0 %v1630_v5  ;;  %v4860_v21 = vld [vmem:[%s6143_s13 + $0x58] sm:$0xff]   ;;  %v4863_v0 = vld [vmem:[%s6143_s13 + $0x20] sm:$0xff]   ;;  %p4992_p1 = scmp.lt.s32.totalorder %s4990_s6, %s4984_s3 }
 0x312   : > { %4298 = vmatprep.subr.bf16.mxu1 %v4807_v6  ;;  %4576 = vmatprep.subr.bf16.mxu0 %v4808_v7  ;;  %v3985_v57 = vld [vmem:[%s6140_s10] ss:$0 sm:$0xff]  ;;  %p4986_p12 = pnand %p4985_p11, %p5220_p5 }
 0x313   : > { %p4993_p2 = por %p4992_p1, %p4991_p0 }
 0x314   : > { %4299 = vmatpush3.bf16.msra.mxu1 %v4809_v8  ;;  %4577 = vmatpush3.bf16.msra.mxu0 %v4808_v7  ;;  %p4987_p13 = pneg %p4986_p12 }
 0x315   : > { %4300 = vmatprep.subr.bf16.mxu1 %v4810_v9  ;;  %4578 = vmatprep.subr.bf16.mxu0 %v4811_v11 }
 0x316   : > { %p4994_p3 = pnand %p4993_p2, %p4987_p13 }
 0x318   : > { %4301 = vmatpush3.bf16.msra.mxu1 %v4812_v12  ;;  %4579 = vmatpush3.bf16.msra.mxu0 %v4811_v11 }
 0x319   : > { %4302 = vmatprep.subr.bf16.mxu1 %v4813_v13  ;;  %4580 = vmatprep.subr.bf16.mxu0 %v4814_v15 }
 0x31c   : > { %4303 = vmatpush3.bf16.msra.mxu1 %v4815_v24  ;;  %4581 = vmatpush3.bf16.msra.mxu0 %v4814_v15 }
 0x31d   : > { %4304 = vmatprep.subr.bf16.mxu1 %v4816_v39  ;;  %4582 = vmatprep.subr.bf16.mxu0 %v4817_v25 }
 0x320   : > { %4305 = vmatpush3.bf16.msra.mxu1 %v4818_v26  ;;  %4583 = vmatpush3.bf16.msra.mxu0 %v4817_v25 }
 0x321   : > { %4306 = vmatprep.subr.bf16.mxu1 %v4819_v27  ;;  %4584 = vmatprep.subr.bf16.mxu0 %v4820_v28 }
 0x324   : > { %4307 = vmatpush3.bf16.msra.mxu1 %v4821_v31  ;;  %4585 = vmatpush3.bf16.msra.mxu0 %v4820_v28 }
 0x325   : > { %2400 = vmatprep.subr.bf16.mxu1 %v4824_v42  ;;  %4330 = vmatprep.subr.bf16.mxu0 %v4854_v18 }
 0x327   : > { %2221 = vmatmul.mubr.bf16.vlgmr.msra.gmra.mrb[24].mxu1 %v1628_v4  ;;  %4587 = vmatmul.mubr.bf16.vlgmr.msra.gmra.mrb[40].mxu0 %v1634_v35 }
 0x328   : > { %2228 = vmatprep.mubr.bf16.mxu1 %v1633_v60  ;;  %2401 = vmatpush1.bf16.msra.mxu1 %v4822_v43 }
 0x329   : > { %2402 = vmatprep.subr.bf16.mxu1 %v4827_v40  ;;  %4331 = vmatpush3.bf16.msra.mxu0 %v4855_v55 }
 0x32a   : > { %4332 = vmatprep.subr.bf16.mxu0 %v4856_v56 }
 0x32c   : > { %2403 = vmatpush1.bf16.msra.mxu1 %v4825_v44 }
 0x32d   : > { %2404 = vmatprep.subr.bf16.mxu1 %v4830_v14  ;;  %4333 = vmatpush3.bf16.msra.mxu0 %v4857_v20 }
 0x32e   : > { %4334 = vmatprep.subr.bf16.mxu0 %v4858_v58 }
 0x32f   : > { %2229 = vmatmul.mubr.bf16.gmra.mrb[28].mxu1 %v1632_v41 }
 0x330   : > { %2432 = vmatprep.mubr.bf16.mxu1 %v5048_v38  ;;  %2405 = vmatpush1.bf16.msra.mxu1 %v4828_v46 }
 0x331   : > { %2406 = vmatprep.subr.bf16.mxu1 %v4833_v47  ;;  %4335 = vmatpush3.bf16.msra.mxu0 %v4859_v59 }
 0x332   : > { %4336 = vmatprep.subr.bf16.mxu0 %v4860_v21 }
 0x334   : > { %2407 = vmatpush1.bf16.msra.mxu1 %v4831_v48 }
 0x335   : > { %2408 = vmatprep.subr.bf16.mxu1 %v4836_v45  ;;  %4337 = vmatpush3.bf16.msra.mxu0 %v4861_v62 }
 0x336   : > { %4338 = vmatprep.subr.bf16.mxu0 %v4862_v63  ;;  %v4847_v63 = vld [vmem:[%s6145_s15 + $0x8] sm:$0xff]  }
 0x338   : > { %2409 = vmatpush1.bf16.msra.mxu1 %v4834_v16 }
 0x339   : > { %2410 = vmatprep.subr.bf16.mxu1 %v4839_v50  ;;  %4339 = vmatpush3.bf16.msra.mxu0 %v4863_v0 }
 0x33a   : > { %4340 = vmatprep.subr.bf16.mxu0 %v4864_v1 }
 0x33c   : > { %2411 = vmatpush1.bf16.msra.mxu1 %v4837_v17 }
 0x33d   : > { %2412 = vmatprep.subr.bf16.mxu1 %v4842_v51 }
 0x340   : > { %2413 = vmatpush1.bf16.msra.mxu1 %v4840_v49 }
 0x341   : > { %2414 = vmatprep.subr.bf16.mxu1 %v4845_v53 }
 0x344   : > { %2415 = vmatpush1.bf16.msra.mxu1 %v4843_v19 }
 0x345   : > { %4590 = vmatprep.subr.bf16.mxu1 %v5644_v54 }
 0x3da   : > { %v4252_v2 = vpop.f32.mrb[16].mxu1  ;;  %v4280_v3 = vpop.f32.mrb[32].mxu0 }
 0x3db   : > { %v4253_v22 = vpop.f32.mrb[17].mxu1  ;;  %v4281_v4 = vpop.f32.mrb[33].mxu0 }
 0x3dc   : > { %v4254_v5 = vadd.f32 %v4253_v22, %v4252_v2  ;;  %v4282_v6 = vadd.f32 %v4281_v4, %v4280_v3  ;;  %v4255_v7 = vpop.f32.mrb[18].mxu1  ;;  %v4283_v8 = vpop.f32.mrb[34].mxu0  ;;  %v4848_v3 = vld [vmem:[%s6145_s15 + $0x10] sm:$0xff]  }
 0x3dd   : > { %v4256_v9 = vpop.f32.mrb[19].mxu1  ;;  %v4284_v11 = vpop.f32.mrb[35].mxu0 }
 0x3de   : > { %v2125_v12 = vadd.f32 %v4254_v5, %v3985_v57  ;;  %v4257_v13 = vadd.f32 %v4256_v9, %v4255_v7  ;;  %v4285_v15 = vadd.f32 %v4284_v11, %v4283_v8  ;;  %v4849_v5 = vld [vmem:[%s6145_s15 + $0x18] sm:$0xff]   ;;  %v4852_v7 = vld [vmem:[%s6145_s15 + $0x30] sm:$0xff]   ;;  %v4865_v8 = vld [vmem:[%s6143_s13 + $0x28] sm:$0xff]  }
 0x3df   : > { %4341 = vmatpush3.bf16.msra.mxu0 %v4865_v8  ;;  %v4866_v9 = vld [vmem:[%s6143_s13 + $0x70] sm:$0xff]   ;;  %v4889_v8 = vld [vmem:[%s6147_s17 + $0xa0] sm:$0xff]  }
 0x3e0   : > { %v2174_v24 = vadd.f32 %v4282_v6, %v2125_v12  ;;  %v2128_v39 = vadd.f32 %v4257_v13, %v3985_v57  ;;  %v4851_v6 = vld [vmem:[%s6145_s15 + $0x28] sm:$0xff]   ;;  %v4867_v11 = vld [vmem:[%s6143_s13 + $0x30] sm:$0xff]   ;;  %4342 = vmatprep.subr.bf16.mxu0 %v4866_v9  ;;  %v4868_v12 = vld [vmem:[%s6143_s13 + $0x78] sm:$0xff]   ;;  %v2310_v13 = vlaneseq }
 0x3e1   : > { %v4890_v9 = vld [vmem:[%s6147_s17 + $0x68] sm:$0xff]  }
 0x3e2   : > { %v2177_v25 = vadd.f32 %v4285_v15, %v2128_v39  ;;  %v4258_v26 = vpop.f32.mrb[20].mxu1  ;;  %v4286_v27 = vpop.f32.mrb[36].mxu0  ;;  %v5723_v15 = vshrl.u32 %v2310_v13, 7  ;;  %v2308_v39 = vld [vmem:[%s6142_s12] sm:$0x3]  ;;  %v4894_v13 = vld [vmem:[%s6147_s17 + $0x70] sm:$0xff]  }
 0x3e3   : > { %v4259_v28 = vpop.f32.mrb[21].mxu1  ;;  %v4287_v29 = vpop.f32.mrb[37].mxu0  ;;  %4343 = vmatpush3.bf16.msra.mxu0 %v4867_v11  ;;  %v4891_v11 = vld [vmem:[%s6147_s17 + $0xe8] sm:$0xff]  }
 0x3e4   : > { %v4260_v10 = vadd.f32 %v4259_v28, %v4258_v26  ;;  %v4288_v31 = vadd.f32 %v4287_v29, %v4286_v27  ;;  %v4261_v32 = vpop.f32.mrb[22].mxu1  ;;  %v4289_v23 = vpop.f32.mrb[38].mxu0  ;;  %4344 = vmatprep.subr.bf16.mxu0 %v4868_v12  ;;  %v4892_v12 = vld [vmem:[%s6147_s17 + $0x28] sm:$0xff]  }
 0x3e5   : > { %v4262_v30 = vpop.f32.mrb[23].mxu1  ;;  %v4290_v33 = vpop.f32.mrb[39].mxu0 }
 0x3e6   : > { %v2133_v34 = vadd.f32 %v4260_v10, %v3985_v57  ;;  %v4263_v36 = vadd.f32 %v4262_v30, %v4261_v32  ;;  %v4291_v37 = vadd.f32 %v4290_v33, %v4289_v23 }
 0x3e8   : > { %v2182_v35 = vadd.f32 %v4288_v31, %v2133_v34  ;;  %v2136_v60 = vadd.f32 %v4263_v36, %v3985_v57 }
 0x3ea   : > { %v2185_v41 = vadd.f32 %v4291_v37, %v2136_v60 }
 0x3fa   : > { %v4308_v42 = vpop.f32.mrb[24].mxu1  ;;  %v4588_v43 = vpop.f32.mrb[40].mxu0 }
 0x3fb   : > { %v4309_v40 = vpop.f32.mrb[25].mxu1  ;;  %v2271_v44 = vpop.f32.mrb[41].mxu0 }
 0x3fc   : > { %v4310_v14 = vadd.f32 %v4309_v40, %v4308_v42  ;;  %v4311_v46 = vpop.f32.mrb[26].mxu1  ;;  %v4589_v47 = vpop.f32.mrb[42].mxu0 }
 0x3fd   : > { %v4312_v48 = vpop.f32.mrb[27].mxu1  ;;  %v2274_v45 = vpop.f32.mrb[43].mxu0 }
 0x3fe   : > { %v2223_v16 = vadd.f32 %v4310_v14, %v2174_v24  ;;  %v4313_v50 = vadd.f32 %v4312_v48, %v4311_v46  ;;  %v2312_v24 = vsub.s32 0, %v5723_v15 }
 0x400   : > { %v2272_v17 = vadd.f32 %v2271_v44, %v2223_v16  ;;  %v2226_v51 = vadd.f32 %v4313_v50, %v2177_v25  ;;  %v2316_v25 = vsub.s32 1, %v5723_v15  ;;  %v2313_v26 = vrot.slane %v2308_v39, %v2312_v24 }
 0x402   : > { %v2275_v49 = vadd.f32 %v2274_v45, %v2226_v51  ;;  %v4314_v53 = vpop.f32.mrb[28].mxu1  ;;  %v2286_v18 = vmax.f32 %v2272_v17, 0.0  ;;  %v2317_v27 = vrot.slane %v2308_v39, %v2316_v25  ;;  %v4895_v39 = vld [vmem:[%s6147_s17 + $0xf0] sm:$0xff]  }
 0x403   : > { %v4315_v19 = vpop.f32.mrb[29].mxu1 }
 0x404   : > { %v2287_v55 = vmax.f32 %v2275_v49, 0.0  ;;  %v4316_v56 = vadd.f32 %v4315_v19, %v4314_v53  ;;  %v4317_v20 = vpop.f32.mrb[30].mxu1 }
 0x405   : > { %v4318_v58 = vpop.f32.mrb[31].mxu1 }
 0x406   : > { %v2290_v59 = vpack.c.bf16 %v2287_v55, %v2286_v18  ;;  %v2231_v21 = vadd.f32 %v4316_v56, %v2182_v35  ;;  %v4319_v62 = vadd.f32 %v4318_v58, %v4317_v20  ;;  %v4870_v56 = vld [vmem:[%s6147_s17 + $0x40] sm:$0xff]  }
 0x407   : > { %v4871_v20 = vld [vmem:[%s6147_s17 + $0xc0] sm:$0xff]  }
 0x408   : > { %v2280_v0 = vadd.f32 %v4588_v43, %v2231_v21  ;;  %v2234_v1 = vadd.f32 %v4319_v62, %v2185_v41  ;;  %2433 = vmatmul.mubr.bf16.vlgmr.msra.gmra.mrb[32].mxu1 %v2290_v59  ;;  %v4872_v58 = vld [vmem:[%s6147_s17] sm:$0xff]   ;;  %v4874_v21 = vld [vmem:[%s6147_s17 + $0x48] sm:$0xff]  }
 0x409   : > { %4591 = vmatpush3.bf16.msra.mxu1 %v5644_v54  ;;  %2442 = vmatprep.mubr.bf16.mxu1 %v5048_v38  ;;  %v4850_v54 = vld [vmem:[%s6145_s15 + $0x20] sm:$0xff]   ;;  %v4875_v62 = vld [vmem:[%s6147_s17 + $0xc8] sm:$0xff]  }
 0x40a   : > { %v2283_v2 = vadd.f32 %v4589_v47, %v2234_v1  ;;  %4592 = vmatprep.subr.bf16.mxu1 %v4847_v63  ;;  %v2288_v57 = vmax.f32 %v2280_v0, 0.0  ;;  %v4873_v59 = vld [vmem:[%s6147_s17 + $0x80] sm:$0xff]   ;;  %v4877_v0 = vld [vmem:[%s6147_s17 + $0x88] sm:$0xff]   ;;  %v4878_v1 = vld [vmem:[%s6147_s17 + $0x50] sm:$0xff]  }
 0x40c   : > { %v2289_v22 = vmax.f32 %v2283_v2, 0.0  ;;  %v4879_v2 = vld [vmem:[%s6147_s17 + $0xd0] sm:$0xff]  }
 0x40d   : > { %4593 = vmatpush3.bf16.msra.mxu1 %v4847_v63  ;;  %v4876_v63 = vld [vmem:[%s6147_s17 + $0x8] sm:$0xff]  }
 0x40e   : > { %4594 = vmatprep.subr.bf16.mxu1 %v4848_v3  ;;  %v2291_v4 = vpack.c.bf16 %v2289_v22, %v2288_v57  ;;  %v4881_v57 = vld [vmem:[%s6147_s17 + $0x90] sm:$0xff]   ;;  %v4882_v22 = vld [vmem:[%s6147_s17 + $0x58] sm:$0xff]  }
 0x410   : > { %2443 = vmatmul.mubr.bf16.gmra.mrb[36].mxu1 %v2291_v4  ;;  %v4883_v4 = vld [vmem:[%s6147_s17 + $0xd8] sm:$0xff]  }
 0x411   : > { %4595 = vmatpush3.bf16.msra.mxu1 %v4848_v3  ;;  %4606 = vmatprep.mubr.bf16.mxu1 %v5511_v52  ;;  %v4853_v52 = vld [vmem:[%s6145_s15 + $0x38] sm:$0xff]   ;;  %v4880_v3 = vld [vmem:[%s6147_s17 + $0x10] sm:$0xff]  }
 0x412   : > { %4596 = vmatprep.subr.bf16.mxu1 %v4849_v5 }
 0x415   : > { %4597 = vmatpush3.bf16.msra.mxu1 %v4849_v5  ;;  %v4884_v5 = vld [vmem:[%s6147_s17 + $0x18] sm:$0xff]  }
 0x416   : > { %4598 = vmatprep.subr.bf16.mxu1 %v4850_v54 }
 0x419   : > { %4599 = vmatpush3.bf16.msra.mxu1 %v4850_v54  ;;  %v4885_v54 = vld [vmem:[%s6147_s17 + $0x98] sm:$0xff]  }
 0x41a   : > { %4600 = vmatprep.subr.bf16.mxu1 %v4851_v6 }
 0x41d   : > { %4601 = vmatpush3.bf16.msra.mxu1 %v4851_v6  ;;  %v4886_v6 = vld [vmem:[%s6147_s17 + $0x60] sm:$0xff]  }
 0x41e   : > { %4602 = vmatprep.subr.bf16.mxu1 %v4852_v7 }
 0x421   : > { %4603 = vmatpush3.bf16.msra.mxu1 %v4852_v7  ;;  %v4887_v7 = vld [vmem:[%s6147_s17 + $0xe0] sm:$0xff]  }
 0x422   : > { %4604 = vmatprep.subr.bf16.mxu1 %v4853_v52 }
 0x425   : > { %4605 = vmatpush3.bf16.msra.mxu1 %v4853_v52  ;;  %v4888_v52 = vld [vmem:[%s6147_s17 + $0x20] sm:$0xff]  }
 0x426   : > { %4390 = vmatprep.subr.bf16.mxu1 %v4871_v20 }
 0x428   : > { %4607 = vmatmul.mubr.bf16.vlgmr.msra.gmra.mrb[40].mxu1 %v5526_v61  ;;  %v4869_v61 = vld [vmem:[%s6143_s13 + $0x38] sm:$0xff]  }
 0x429   : > { %4345 = vmatpush3.bf16.msra.mxu0 %v4869_v61  ;;  %4391 = vmatpush3.bf16.msra.mxu1 %v4873_v59  ;;  %v4893_v61 = vld [vmem:[%s6147_s17 + $0xa8] sm:$0xff]  }
 0x42a   : > { %4368 = vmatprep.subr.bf16.mxu0 %v4870_v56  ;;  %4392 = vmatprep.subr.bf16.mxu1 %v4875_v62 }
 0x42d   : > { %4393 = vmatpush3.bf16.msra.mxu1 %v4877_v0 }
 0x42e   : > { %4394 = vmatprep.subr.bf16.mxu1 %v4879_v2  ;;  %v4903_v2 = vld [vmem:[%s6147_s17 + $0x100] sm:$0xff]  }
 0x431   : > { %4395 = vmatpush3.bf16.msra.mxu1 %v4881_v57 }
 0x432   : > { %4396 = vmatprep.subr.bf16.mxu1 %v4883_v4 }
 0x435   : > { %4397 = vmatpush3.bf16.msra.mxu1 %v4885_v54 }
 0x436   : > { %4398 = vmatprep.subr.bf16.mxu1 %v4887_v7 }
 0x439   : > { %4399 = vmatpush3.bf16.msra.mxu1 %v4889_v8 }
 0x43a   : > { %4400 = vmatprep.subr.bf16.mxu1 %v4891_v11  ;;  %v4907_v11 = vld [vmem:[%s6147_s17 + $0x188] sm:$0xff]  }
 0x43d   : > { %4401 = vmatpush3.bf16.msra.mxu1 %v4893_v61  ;;  %v4909_v61 = vld [vmem:[%s6147_s17 + $0x110] sm:$0xff]  }
 0x43e   : > { %4402 = vmatprep.subr.bf16.mxu1 %v4895_v39  ;;  %v4911_v39 = vld [vmem:[%s6147_s17 + $0x158] sm:$0xff]  }
 0x4db   : > { %v2434_v28 = vpop.f32.mrb[32].mxu1 }
 0x4dc   : > { %v2435_v29 = vadd.f32 %v2434_v28, %v2313_v26  ;;  %v2436_v10 = vpop.f32.mrb[33].mxu1  ;;  %v4898_v28 = vld [vmem:[%s6147_s17 + $0x78] sm:$0xff]  }
 0x4dd   : > { %v2437_v31 = vadd.f32 %v2436_v10, %v2317_v27  ;;  %v2438_v32 = vpop.f32.mrb[34].mxu1  ;;  %v4900_v10 = vld [vmem:[%s6147_s17 + $0x38] sm:$0xff]  }
 0x4de   : > { %v2439_v23 = vadd.f32 %v2438_v32, %v2313_v26  ;;  %v2440_v30 = vpop.f32.mrb[35].mxu1  ;;  %v2453_v34 = vmax.f32 %v2435_v29, 0.0  ;;  %v4899_v29 = vld [vmem:[%s6147_s17 + $0xf8] sm:$0xff]   ;;  %v4902_v32 = vld [vmem:[%s6147_s17 + $0x140] sm:$0xff]  }
 0x4df   : > { %v2441_v33 = vadd.f32 %v2440_v30, %v2317_v27  ;;  %v2454_v37 = vmax.f32 %v2437_v31, 0.0  ;;  %v4901_v31 = vld [vmem:[%s6147_s17 + $0xb8] sm:$0xff]  }
 0x4e0   : > { %v2455_v36 = vmax.f32 %v2439_v23, 0.0  ;;  %v5841_v23 = vld [vmem:[#allocation2] sm:$0xff] }
 0x4e1   : > { %v2456_v35 = vmax.f32 %v2441_v33, 0.0  ;;  %v4058_v33 = vld [vmem:[%s6144_s14] ss:$0 sm:$0xff] }
 0x4e2   : > { %v2461_v60 = vpack.c.bf16 %v2455_v36, %v2453_v34 }
 0x4e3   : > { %v2462_v41 = vpack.c.bf16 %v2456_v35, %v2454_v37  ;;  %v2444_v42 = vpop.f32.mrb[36].mxu1 }
 0x4e4   : > { %v2445_v43 = vadd.f32 %v2444_v42, %v2313_v26  ;;  %v2446_v40 = vpop.f32.mrb[37].mxu1  ;;  %v4083_v42 = vld [vmem:[%s6146_s16] ss:$0 sm:$0xff] }
 0x4e5   : > { %v2447_v44 = vadd.f32 %v2446_v40, %v2317_v27  ;;  %v2448_v14 = vpop.f32.mrb[38].mxu1  ;;  %2632 = vmatprep.mubr.bf16.mxu0 %v2462_v41 }
 0x4e6   : > { %v2449_v46 = vadd.f32 %v2448_v14, %v2313_v26  ;;  %v2450_v47 = vpop.f32.mrb[39].mxu1  ;;  %2633 = vmatmul.mubr.bf16.vlgmr.msra.gmra.mrb[44].mxu0 %v2461_v60  ;;  %v2457_v45 = vmax.f32 %v2445_v43, 0.0  ;;  %v4896_v26 = vld [vmem:[%s6147_s17 + $0x30] sm:$0xff]  }
 0x4e7   : > { %v2451_v48 = vadd.f32 %v2450_v47, %v2317_v27  ;;  %v2458_v50 = vmax.f32 %v2447_v44, 0.0  ;;  %4369 = vmatpush3.bf16.msra.mxu0 %v4872_v58  ;;  %v4897_v27 = vld [vmem:[%s6147_s17 + $0xb0] sm:$0xff]  }
 0x4e8   : > { %v2459_v16 = vmax.f32 %v2449_v46, 0.0  ;;  %4370 = vmatprep.subr.bf16.mxu0 %v4874_v21  ;;  %4403 = vmatpush3.bf16.msra.mxu1 %v4897_v27  ;;  %v4913_v27 = vld [vmem:[%s6147_s17 + $0x198] sm:$0xff]  }
 0x4e9   : > { %v2460_v17 = vmax.f32 %v2451_v48, 0.0  ;;  %4404 = vmatprep.subr.bf16.mxu1 %v4899_v29  ;;  %v4915_v29 = vld [vmem:[%s6147_s17 + $0x120] sm:$0xff]  }
 0x4ea   : > { %v2463_v51 = vpack.c.bf16 %v2459_v16, %v2457_v45 }
 0x4eb   : > { %v2464_v49 = vpack.c.bf16 %v2460_v17, %v2458_v50  ;;  %4371 = vmatpush3.bf16.msra.mxu0 %v4876_v63 }
 0x4ec   : > { %4372 = vmatprep.subr.bf16.mxu0 %v4878_v1  ;;  %4405 = vmatpush3.bf16.msra.mxu1 %v4901_v31  ;;  %v4917_v31 = vld [vmem:[%s6147_s17 + $0x168] sm:$0xff]  }
 0x4ed   : > { %2640 = vmatprep.mubr.bf16.mxu0 %v2464_v49  ;;  %4610 = vmatprep.subr.bf16.mxu1 %v5841_v23 }
 0x4ee   : > { %2641 = vmatmul.mubr.bf16.gmra.mrb[48].mxu0 %v2463_v51 }
 0x4ef   : > { %4373 = vmatpush3.bf16.msra.mxu0 %v4880_v3  ;;  %v4904_v3 = vld [vmem:[%s6147_s17 + $0x180] sm:$0xff]  }
 0x4f0   : > { %4374 = vmatprep.subr.bf16.mxu0 %v4882_v22 }
 0x4f3   : > { %4375 = vmatpush3.bf16.msra.mxu0 %v4884_v5 }
 0x4f4   : > { %4376 = vmatprep.subr.bf16.mxu0 %v4886_v6 }
 0x4f7   : > { %4377 = vmatpush3.bf16.msra.mxu0 %v4888_v52  ;;  %v4905_v52 = vld [vmem:[%s6147_s17 + $0x148] sm:$0xff]  }
 0x4f8   : > { %4378 = vmatprep.subr.bf16.mxu0 %v4890_v9  ;;  %v4906_v9 = vld [vmem:[%s6147_s17 + $0x108] sm:$0xff]  }
 0x4fb   : > { %v5734_v53 = vpop.f32.mrb[40].mxu1  ;;  %4379 = vmatpush3.bf16.msra.mxu0 %v4892_v12  ;;  %v4908_v12 = vld [vmem:[%s6147_s17 + $0x150] sm:$0xff]  }
 0x4fc   : > { %v5736_v19 = vpop.f32.mrb[41].mxu1  ;;  %4380 = vmatprep.subr.bf16.mxu0 %v4894_v13  ;;  %v4910_v13 = vld [vmem:[%s6147_s17 + $0x190] sm:$0xff]  }
 0x4fd   : > { %v5738_v18 = vpop.f32.mrb[42].mxu1 }
 0x4fe   : > { %v5740_v55 = vpop.f32.mrb[43].mxu1 }
 0x4ff   : > { %4381 = vmatpush3.bf16.msra.mxu0 %v4896_v26  ;;  %v4912_v26 = vld [vmem:[%s6147_s17 + $0x118] sm:$0xff]  }
 0x500   : > { %4382 = vmatprep.subr.bf16.mxu0 %v4898_v28  ;;  %v4914_v28 = vld [vmem:[%s6147_s17 + $0x160] sm:$0xff]  }
 0x503   : > { %4383 = vmatpush3.bf16.msra.mxu0 %v4900_v10  ;;  %v4916_v10 = vld [vmem:[%s6147_s17 + $0x1a0] sm:$0xff]  }
 0x504   : > { %4412 = vmatprep.subr.bf16.mxu0 %v4902_v32  ;;  %v4918_v32 = vld [vmem:[%s6147_s17 + $0x128] sm:$0xff]  }
 0x5b9   : > { %v4346_v30 = vpop.f32.mrb[44].mxu0 }
 0x5ba   : > { %v4347_v34 = vpop.f32.mrb[45].mxu0 }
 0x5bb   : > { %v4348_v36 = vadd.f32 %v4347_v34, %v4346_v30  ;;  %v4349_v37 = vpop.f32.mrb[46].mxu0  ;;  %v4919_v30 = vld [vmem:[%s6147_s17 + $0x1a8] sm:$0xff]   ;;  %v4921_v34 = vld [vmem:[%s6147_s17 + $0x130] sm:$0xff]  }
 0x5bc   : > { %v4350_v35 = vpop.f32.mrb[47].mxu0 }
 0x5bd   : > { %v2635_v60 = vadd.f32 %v4348_v36, %v4058_v33  ;;  %v4351_v41 = vadd.f32 %v4350_v35, %v4349_v37  ;;  %v4922_v36 = vld [vmem:[%s6147_s17 + $0x1b0] sm:$0xff]   ;;  %v4923_v37 = vld [vmem:[%s6147_s17 + $0x178] sm:$0xff]  }
 0x5be   : > { %v4924_v35 = vld [vmem:[%s6147_s17 + $0x138] sm:$0xff]  }
 0x5bf   : > { %v2762_v43 = vadd.f32 %v5736_v19, %v2635_v60  ;;  %v2638_v40 = vadd.f32 %v4351_v41, %v4058_v33  ;;  %v4925_v60 = vld [vmem:[%s6147_s17 + $0x1b8] sm:$0xff]  }
 0x5c1   : > { %v2773_v44 = vadd.f32 %v4083_v42, %v2762_v43  ;;  %v2763_v14 = vadd.f32 %v5740_v55, %v2638_v40  ;;  %v4352_v46 = vpop.f32.mrb[48].mxu0 }
 0x5c2   : > { %v4353_v47 = vpop.f32.mrb[49].mxu0 }
 0x5c3   : > { %v2774_v48 = vadd.f32 %v4083_v42, %v2763_v14  ;;  %v4354_v45 = vadd.f32 %v4353_v47, %v4352_v46  ;;  %v4355_v16 = vpop.f32.mrb[50].mxu0  ;;  %v2777_v17 = vmax.f32 %v2773_v44, 0.0  ;;  %v4926_v44 = vld [vmem:[%s6149_s19] ss:$8 sps:$4 sm:$0xff]   ;;  %v4928_v14 = vld [vmem:[%s6149_s19 + $0x4] ss:$8 sps:$4 sm:$0xff]  }
 0x5c4   : > { %v4356_v50 = vpop.f32.mrb[51].mxu0  ;;  %v4931_v46 = vld [vmem:[%s6149_s19 + $0x14] ss:$8 sps:$4 sm:$0xff]   ;;  %v4929_v47 = vld [vmem:[%s6149_s19 + $0x10] ss:$8 sps:$4 sm:$0xff]  }
 0x5c5   : > { %v2778_v51 = vmax.f32 %v2774_v48, 0.0  ;;  %v2643_v49 = vadd.f32 %v4354_v45, %v4058_v33  ;;  %v4357_v56 = vadd.f32 %v4356_v50, %v4355_v16  ;;  %v4932_v48 = vld [vmem:[%s6149_s19 + $0x20] ss:$8 sps:$4 sm:$0xff]   ;;  %v4937_v45 = vld [vmem:[%s6149_s19 + $0x34] ss:$8 sps:$4 sm:$0xff]  }
 0x5c6   : > { %v4935_v16 = vld [vmem:[%s6149_s19 + $0x30] ss:$8 sps:$4 sm:$0xff]   ;;  %v4940_v50 = vld [vmem:[%s6149_s19 + $0x44] ss:$8 sps:$4 sm:$0xff]  }
 0x5c7   : > { %v2781_v20 = vmax.f32 %v2777_v17, %v2778_v51  ;;  %v2764_v58 = vadd.f32 %v5734_v53, %v2643_v49  ;;  %v2646_v59 = vadd.f32 %v4357_v56, %v4058_v33  ;;  %v4920_v33 = vld [vmem:[%s6147_s17 + $0x170] sm:$0xff]   ;;  %v4938_v17 = vld [vmem:[%s6149_s19 + $0x40] ss:$8 sps:$4 sm:$0xff]   ;;  %v4946_v56 = vld [vmem:[%s6149_s19 + $0x64] ss:$8 sps:$4 sm:$0xff]  }
 0x5c8   : > { %v4943_v51 = vld [vmem:[%s6149_s19 + $0x54] ss:$8 sps:$4 sm:$0xff]   ;;  %v4941_v49 = vld [vmem:[%s6149_s19 + $0x50] ss:$8 sps:$4 sm:$0xff]  }
 0x5c9   : > { %v2775_v21 = vadd.f32 %v4083_v42, %v2764_v58  ;;  %v2765_v19 = vadd.f32 %v5738_v18, %v2646_v59  ;;  %v4949_v58 = vld [vmem:[%s6149_s19 + $0x74] ss:$8 sps:$4 sm:$0xff]   ;;  %v4947_v59 = vld [vmem:[%s6149_s19 + $0x70] ss:$8 sps:$4 sm:$0xff]  }
 0x5cb   : > { %v2779_v62 = vmax.f32 %v2775_v21, 0.0  ;;  %v2776_v63 = vadd.f32 %v4083_v42, %v2765_v19  ;;  %v4958_v21 = vld [vmem:[%s6151_s21 + $0x40] sm:$0xff]  }
 0x5cc   : > { %v4959_v19 = vld [vmem:[%s6151_s21] sm:$0xff]  }
 0x5cd   : > { %v2782_v55 = vmax.f32 %v2781_v20, %v2779_v62  ;;  %v2780_v0 = vmax.f32 %v2776_v63, 0.0  ;;  %v4944_v20 = vld [vmem:[%s6149_s19 + $0x60] ss:$8 sps:$4 sm:$0xff]  }
 0x5ce   : > { %v4960_v62 = vld [vmem:[%s6151_s21 + $0x48] sm:$0xff]  }
 0x5cf   : > { %v2783_v1 = vmax.f32 %v2782_v55, %v2780_v0  ;;  %v4961_v63 = vld [vmem:[%s6151_s21 + $0x8] sm:$0xff]   ;;  %v4962_v55 = vld [vmem:[%s6151_s21 + $0x50] sm:$0xff]  }
 0x5d0   : > { %v4963_v0 = vld [vmem:[%s6151_s21 + $0x10] sm:$0xff]  }
 0x5d1   : > { %2786 = vst [vmem:[#allocation3 + $0x8] sm:$0xff] %v2783_v1  ;;  %v4964_v1 = vld [vmem:[%s6151_s21 + $0x58] sm:$0xff]  }
 0x5d8   : > { %v2790_v57 = vld [vmem:[#allocation3 + $0x6] ss:$2 sm:$0xf]  ;;  %v2788_v18 = vld [vmem:[#allocation3 + $0x5] ss:$2 sm:$0xf] }
 0x5d9   : > { %v2794_v53 = vld [vmem:[#allocation3 + $0x8] ss:$2 sm:$0xf]  ;;  %v2802_v22 = vpack.c.bf16 %v2790_v57, %v2790_v57  ;;  %v2792_v5 = vld [vmem:[#allocation3 + $0x7] ss:$2 sm:$0xf]  ;;  %v2801_v54 = vpack.c.bf16 %v2788_v18, %v2788_v18 }
 0x5da   : > { %v5860_v4 = vpack.c.bf16 %v2794_v53, %v2794_v53  ;;  %v2803_v6 = vpack.c.bf16 %v2792_v5, %v2792_v5  ;;  %v2798_v7 = vld [vmem:[#allocation3 + $0xa] ss:$2 sm:$0xf]  ;;  %v2796_v41 = vld [vmem:[#allocation3 + $0x9] ss:$2 sm:$0xf] }
 0x5db   : > { %3295 = vmatprep.mubr.bf16.mxu0 %v2802_v22  ;;  %v2806_v8 = vpack.c.bf16 %v2798_v7, %v2798_v7  ;;  %v2800_v42 = vld [vmem:[#allocation3 + $0xb] ss:$2 sm:$0xf]  ;;  %v2805_v43 = vpack.c.bf16 %v2796_v41, %v2796_v41  ;;  %v4968_v53 = vld [vmem:[%s6151_s21 + $0x68] sm:$0xff]  }
 0x5dc   : > { %3335 = vmatprep.mubr.bf16.mxu1 %v5860_v4  ;;  %3296 = vmatmul.mubr.bf16.vlgmr.msra.gmra.mrb[52].mxu0 %v2801_v54  ;;  %v2807_v40 = vpack.c.bf16 %v2800_v42, %v2800_v42  ;;  %v4967_v57 = vld [vmem:[%s6151_s21 + $0x20] sm:$0xff]   ;;  %v4969_v22 = vld [vmem:[%s6151_s21 + $0x28] sm:$0xff]   ;;  %v4952_v42 = vld [vmem:[%s6153_s23 + $0x10] sm:$0xff]  }
 0x5dd   : > { %3336 = vmatmul.mubr.bf16.vlgmr.msra.gmra.mrb[44].mxu1 %v2803_v6  ;;  %4413 = vmatpush3.bf16.msra.mxu0 %v4903_v2  ;;  %v4965_v2 = vld [vmem:[%s6151_s21 + $0x18] sm:$0xff]   ;;  %v4084_v54 = vld [vmem:[%s6148_s18] ss:$0 sm:$0xff]  ;;  %v4951_v41 = vld [vmem:[%s6153_s23 + $0x8] sm:$0xff]  }
 0x5de   : > { %4611 = vmatpush3.bf16.msra.mxu1 %v4904_v3  ;;  %3375 = vmatprep.mubr.bf16.mxu0 %v2806_v8  ;;  %v4966_v3 = vld [vmem:[%s6151_s21 + $0x60] sm:$0xff]  }
 0x5df   : > { %4414 = vmatprep.subr.bf16.mxu0 %v4905_v52  ;;  %4612 = vmatprep.subr.bf16.mxu1 %v5841_v23 }
 0x5e0   : > { %4626 = vmatprep.mubr.msk.bf16.mxu1 %vm5050_vm0, %v5841_v23 }
 0x5e1   : > { %4415 = vmatpush3.bf16.msra.mxu0 %v4906_v9 }
 0x5e2   : > { %4613 = vmatpush3.bf16.msra.mxu1 %v4907_v11  ;;  %4416 = vmatprep.subr.bf16.mxu0 %v4908_v12 }
 0x5e3   : > { %4614 = vmatprep.subr.bf16.mxu1 %v5841_v23 }
 0x5e5   : > { %4417 = vmatpush3.bf16.msra.mxu0 %v4909_v61 }
 0x5e6   : > { %4615 = vmatpush3.bf16.msra.mxu1 %v4910_v13  ;;  %4418 = vmatprep.subr.bf16.mxu0 %v4911_v39 }
 0x5e7   : > { %4616 = vmatprep.subr.bf16.mxu1 %v5841_v23 }
 0x5e9   : > { %4419 = vmatpush3.bf16.msra.mxu0 %v4912_v26 }
 0x5ea   : > { %4617 = vmatpush3.bf16.msra.mxu1 %v4913_v27  ;;  %4420 = vmatprep.subr.bf16.mxu0 %v4914_v28 }
 0x5eb   : > { %4618 = vmatprep.subr.bf16.mxu1 %v5841_v23 }
 0x5ed   : > { %4421 = vmatpush3.bf16.msra.mxu0 %v4915_v29 }
 0x5ee   : > { %4619 = vmatpush3.bf16.msra.mxu1 %v4916_v10  ;;  %4422 = vmatprep.subr.bf16.mxu0 %v4917_v31 }
 0x5ef   : > { %4620 = vmatprep.subr.bf16.mxu1 %v5841_v23 }
 0x5f1   : > { %4423 = vmatpush3.bf16.msra.mxu0 %v4918_v32 }
 0x5f2   : > { %4621 = vmatpush3.bf16.msra.mxu1 %v4919_v30  ;;  %4424 = vmatprep.subr.bf16.mxu0 %v4920_v33 }
 0x5f3   : > { %4622 = vmatprep.subr.bf16.mxu1 %v5841_v23 }
 0x5f5   : > { %4425 = vmatpush3.bf16.msra.mxu0 %v4921_v34 }
 0x5f6   : > { %4623 = vmatpush3.bf16.msra.mxu1 %v4922_v36  ;;  %4426 = vmatprep.subr.bf16.mxu0 %v4923_v37 }
 0x5f7   : > { %4624 = vmatprep.subr.bf16.mxu1 %v5841_v23 }
 0x5f9   : > { %4427 = vmatpush3.bf16.msra.mxu0 %v4924_v35  ;;  %v4950_v35 = vld [vmem:[%s6153_s23] sm:$0xff]  }
 0x5fa   : > { %4625 = vmatpush3.bf16.msra.mxu1 %v4925_v60  ;;  %3533 = vmatprep.subr.bf16.mxu0 %v4928_v14  ;;  %v4956_v14 = vld [vmem:[%s6153_s23 + $0x30] sm:$0xff]  }
 0x5fb   : > { %4443 = vmatprep.subr.bf16.mxu1 %v4958_v21 }
 0x5fc   : > { %3376 = vmatmul.mubr.bf16.vlgmr.msra.gmra.mrb[56].mxu0 %v2805_v43  ;;  %v4953_v43 = vld [vmem:[%s6153_s23 + $0x18] sm:$0xff]  }
 0x5fd   : > { %4627 = vmatmul.mubr.bf16.vlgmr.msra.gmra.mrb[48].mxu1 %v2807_v40  ;;  %3565 = vmatprep.mubr.bf16.mxu0 %v5048_v38  ;;  %v4934_v38 = vld [vmem:[%s6149_s19 + $0x24] ss:$8 sps:$4 sm:$0xff]  }
 0x5fe   : > { %3534 = vmatpush1.bf16.msra.mxu0 %v4926_v44  ;;  %4444 = vmatpush3.bf16.msra.mxu1 %v4959_v19  ;;  %v4954_v40 = vld [vmem:[%s6153_s23 + $0x20] sm:$0xff]   ;;  %v4955_v44 = vld [vmem:[%s6153_s23 + $0x28] sm:$0xff]  }
 0x5ff   : > { %3535 = vmatprep.subr.bf16.mxu0 %v4931_v46  ;;  %4445 = vmatprep.subr.bf16.mxu1 %v4960_v62  ;;  %v4957_v46 = vld [vmem:[%s6153_s23 + $0x38] sm:$0xff]  }
 0x602   : > { %3536 = vmatpush1.bf16.msra.mxu0 %v4929_v47  ;;  %4446 = vmatpush3.bf16.msra.mxu1 %v4961_v63  ;;  %v4970_v47 = vld [vmem:[%s6151_s21 + $0x70] sm:$0xff]  }
 0x603   : > { %3537 = vmatprep.subr.bf16.mxu0 %v4934_v38  ;;  %4447 = vmatprep.subr.bf16.mxu1 %v4962_v55  ;;  %v4971_v38 = vld [vmem:[%s6151_s21 + $0x30] sm:$0xff]  }
 0x606   : > { %3538 = vmatpush1.bf16.msra.mxu0 %v4932_v48  ;;  %4448 = vmatpush3.bf16.msra.mxu1 %v4963_v0  ;;  %v4972_v48 = vld [vmem:[%s6151_s21 + $0x78] sm:$0xff]  }
 0x607   : > { %3539 = vmatprep.subr.bf16.mxu0 %v4937_v45  ;;  %4449 = vmatprep.subr.bf16.mxu1 %v4964_v1 }
 0x60a   : > { %3540 = vmatpush1.bf16.msra.mxu0 %v4935_v16  ;;  %4450 = vmatpush3.bf16.msra.mxu1 %v4965_v2 }
 0x60b   : > { %3541 = vmatprep.subr.bf16.mxu0 %v4940_v50  ;;  %4451 = vmatprep.subr.bf16.mxu1 %v4966_v3 }
 0x60e   : > { %3542 = vmatpush1.bf16.msra.mxu0 %v4938_v17  ;;  %4452 = vmatpush3.bf16.msra.mxu1 %v4967_v57 }
 0x60f   : > { %3543 = vmatprep.subr.bf16.mxu0 %v4943_v51  ;;  %4453 = vmatprep.subr.bf16.mxu1 %v4968_v53  ;;  %v4182_v53 = vld [vmem:[%s6154_s24] ss:$0 sm:$0xff] }
 0x612   : > { %3544 = vmatpush1.bf16.msra.mxu0 %v4941_v49  ;;  %4454 = vmatpush3.bf16.msra.mxu1 %v4969_v22 }
 0x613   : > { %3545 = vmatprep.subr.bf16.mxu0 %v4946_v56  ;;  %4455 = vmatprep.subr.bf16.mxu1 %v4970_v47 }
 0x616   : > { %3546 = vmatpush1.bf16.msra.mxu0 %v4944_v20  ;;  %4456 = vmatpush3.bf16.msra.mxu1 %v4971_v38 }
 0x617   : > { %3547 = vmatprep.subr.bf16.mxu0 %v4949_v58  ;;  %4457 = vmatprep.subr.bf16.mxu1 %v4972_v48 }
 0x61a   : > { %3548 = vmatpush1.bf16.msra.mxu0 %v4947_v59 }
 0x61b   : > { %4630 = vmatprep.subr.bf16.mxu0 %v5841_v23 }
 0x6af   : > { %v4384_v18 = vpop.f32.mrb[52].mxu0 }
 0x6b0   : > { %v4406_v5 = vpop.f32.mrb[44].mxu1  ;;  %v4385_v6 = vpop.f32.mrb[53].mxu0 }
 0x6b1   : > { %v4407_v7 = vpop.f32.mrb[45].mxu1  ;;  %v4386_v52 = vadd.f32 %v4385_v6, %v4384_v18  ;;  %v4387_v9 = vpop.f32.mrb[54].mxu0 }
 0x6b2   : > { %v4408_v8 = vadd.f32 %v4407_v7, %v4406_v5  ;;  %v4409_v11 = vpop.f32.mrb[46].mxu1  ;;  %v4388_v12 = vpop.f32.mrb[55].mxu0 }
 0x6b3   : > { %v4410_v61 = vpop.f32.mrb[47].mxu1  ;;  %v3298_v13 = vadd.f32 %v4386_v52, %v4084_v54 }
 0x6b5   : > { %v3338_v39 = vadd.f32 %v4408_v8, %v3298_v13 }
 0x6cf   : > { %v4428_v26 = vpop.f32.mrb[56].mxu0 }
 0x6d0   : > { %v3417_v27 = vpop.f32.mrb[48].mxu1  ;;  %v4429_v28 = vpop.f32.mrb[57].mxu0 }
 0x6d1   : > { %v4628_v29 = vpop.f32.mrb[49].mxu1  ;;  %v4430_v10 = vadd.f32 %v4429_v28, %v4428_v26  ;;  %v4431_v31 = vpop.f32.mrb[58].mxu0 }
 0x6d2   : > { %v3420_v32 = vpop.f32.mrb[50].mxu1  ;;  %v4432_v30 = vpop.f32.mrb[59].mxu0 }
 0x6d3   : > { %v4629_v33 = vpop.f32.mrb[51].mxu1  ;;  %v3378_v34 = vadd.f32 %v4430_v10, %v3338_v39 }
 0x6d5   : > { %v3418_v36 = vadd.f32 %v3417_v27, %v3378_v34 }
 0x6d7   : > { %v3423_v37 = vmax.f32 %v3418_v36, 0.0 }
 0x6d9   : > { %v3424_v60 = vpack.c.bf16 %v3423_v37, %v3423_v37 }
 0x6db   : > { %3566 = vmatmul.mubr.bf16.vlgmr.msra.gmra.mrb[60].mxu0 %v3424_v60 }
 0x6dc   : > { %4631 = vmatpush3.bf16.msra.mxu0 %v4950_v35  ;;  %4646 = vmatprep.mubr.msk.bf16.mxu0 %vm5050_vm0, %v5841_v23 }
 0x6dd   : > { %4632 = vmatprep.subr.bf16.mxu0 %v5841_v23 }
 0x6e0   : > { %4633 = vmatpush3.bf16.msra.mxu0 %v4951_v41 }
 0x6e1   : > { %4634 = vmatprep.subr.bf16.mxu0 %v5841_v23 }
 0x6e4   : > { %4635 = vmatpush3.bf16.msra.mxu0 %v4952_v42 }
 0x6e5   : > { %4636 = vmatprep.subr.bf16.mxu0 %v5841_v23 }
 0x6e8   : > { %4637 = vmatpush3.bf16.msra.mxu0 %v4953_v43 }
 0x6e9   : > { %4638 = vmatprep.subr.bf16.mxu0 %v5841_v23 }
 0x6ec   : > { %4639 = vmatpush3.bf16.msra.mxu0 %v4954_v40 }
 0x6ed   : > { %4640 = vmatprep.subr.bf16.mxu0 %v5841_v23 }
 0x6f0   : > { %4641 = vmatpush3.bf16.msra.mxu0 %v4955_v44 }
 0x6f1   : > { %4642 = vmatprep.subr.bf16.mxu0 %v5841_v23 }
 0x6f4   : > { %4643 = vmatpush3.bf16.msra.mxu0 %v4956_v14 }
 0x6f5   : > { %4644 = vmatprep.subr.bf16.mxu0 %v5841_v23  ;;  %v4973_v23 = vld [vmem:[%s6151_s21 + $0x38] sm:$0xff]  }
 0x6f6   : > { %4458 = vmatpush3.bf16.msra.mxu1 %v4973_v23 }
 0x6f8   : > { %4645 = vmatpush3.bf16.msra.mxu0 %v4957_v46 }
 0x6fb   : > { %4647 = vmatmul.mubr.bf16.vlgmr.msra.gmra.mrb[64].mxu0 %v5860_v4  ;;  %v3441_v4 = vld [vmem:[%s6150_s20] sm:$0x3] }
 0x6fc   : > { %v3446_v45 = vrot.slane %v3441_v4, %v2312_v24  ;;  %v3450_v16 = vrot.slane %v3441_v4, %v2316_v25  ;;  %v4157_v25 = vld [vmem:[%s6152_s22] ss:$0 sm:$0xff] }
 0x7ae   : > { %v3567_v50 = vpop.f32.mrb[60].mxu0 }
 0x7af   : > { %v3568_v17 = vadd.f32 %v3567_v50, %v3446_v45  ;;  %v3569_v51 = vpop.f32.mrb[61].mxu0 }
 0x7b0   : > { %v3570_v49 = vadd.f32 %v3569_v51, %v3450_v16  ;;  %v3571_v56 = vpop.f32.mrb[62].mxu0 }
 0x7b1   : > { %v3574_v20 = vmax.f32 %v3568_v17, 0.0  ;;  %v3572_v58 = vpop.f32.mrb[63].mxu0 }
 0x7b2   : > { %v3575_v59 = vmax.f32 %v3570_v49, 0.0 }
 0x7b3   : > { %v3576_v19 = vpack.c.bf16 %v3574_v20, %v3574_v20 }
 0x7b4   : > { %v3577_v21 = vpack.c.bf16 %v3575_v59, %v3575_v59 }
 0x7b6   : > { %3745 = vmatprep.mubr.bf16.mxu1 %v3577_v21 }
 0x7b7   : > { %3746 = vmatmul.mubr.bf16.vlgmr.msra.gmra.mrb[52].mxu1 %v3576_v19 }
 0x7ce   : > { %v3851_v62 = vpop.f32.mrb[64].mxu0 }
 0x7cf   : > { %v4648_v63 = vpop.f32.mrb[65].mxu0 }
 0x7d0   : > { %v3854_v24 = vpop.f32.mrb[66].mxu0 }
 0x7d1   : > { %v4649_v55 = vpop.f32.mrb[67].mxu0 }
 0x88a   : > { %v4459_v15 = vpop.f32.mrb[52].mxu1 }
 0x88b   : > { %v4460_v0 = vpop.f32.mrb[53].mxu1 }
 0x88c   : > { %v4461_v1 = vadd.f32 %v4460_v0, %v4459_v15  ;;  %v4462_v2 = vpop.f32.mrb[54].mxu1 }
 0x88d   : > { %v4463_v3 = vpop.f32.mrb[55].mxu1 }
 0x88e   : > { %v3748_v57 = vadd.f32 %v4461_v1, %v4157_v25 }
 0x890   : > { %v3857_v22 = vadd.f32 %v3851_v62, %v3748_v57 }
 0x892   : > { %v3865_v18 = vadd.f32 %v4182_v53, %v3857_v22 }
 0x894   : > { %v3866_v5 = vmax.f32 %v3865_v18, 0.0 }
 0x896   : > { %3867 = vst [vmem:[%s757_s29] sm:$0xf] %v3866_v5 }
 0x897   : > { %4997 = shalt.err (!%p4994_p3)
}
 0x898   : > { %s4998_s25 = scalar_lea.hbm %s6088_s9, 64  ;;  %s5002_s5 = scalar_lea.hbm %s6200_s0, 128 }
 0x899   : > { %p4999_p4 = scmp.ne.s32.totalorder %s6088_s9, %s4998_s25  ;;  %p5003_p9 = scmp.lt.u32.totalorder %s6088_s9, %s6200_s0 }
 0x89a   : > { %p5004_p10 = scmp.lt.u32.totalorder %s5002_s5, %s4998_s25  ;;  %p5006_p12 = scmp.lt.u32.totalorder %s4998_s25, %s6088_s9 }
 0x89b   : > { %p5000_p7 = pnand %p4999_p4, %p5220_p5 }
 0x89c   : > { %p5005_p11 = por %p5004_p10, %p5003_p9 }
 0x89d   : > { %p5001_p8 = pneg %p5000_p7 }
 0x89e   : > { %p5007_p13 = por %p5006_p12, %p5005_p11 }
 0x8a0   : > { %p5008_p0 = pnand %p5007_p13, %p5001_p8 }
 0x8a2   : > { %5011 = shalt.err (!%p5008_p0)
}
 0x8a3   : > { %4650 = dma.vmem_to_hbm [thread:$0]  (%p5220_p5), %s6090_s26, 64, %s6088_s9, %s3869_s8  }
 0x8a4 PF: > { %s6201_s3 = sld [smem:[#allocation9_spill]]  ;;  %s6202_s1 = sld [smem:[#allocation7_spill]] }
 0x8aa   : > { %p4656_p1 = scmp.ge.s32.totalorder %s6201_s3, 2  ;;  %s3894_s27 = sand.u32 1, %s6202_s1  }
 0x8ab   : > { %s3895_s29 = scalar_lea.sflag [#allocation5], %s3894_s27 }
 0x8ac   : > { %p4653_p2 = pnand %p4656_p1, %p5224_p6 }
 0x8ae   : > { %5029 = dma.done.wait (!%p4653_p2), %s3895_s29, 64  }
 0x8af   : > { %5031 = vsyncadd (!%p4653_p2), %s3895_s29, 4294967232  ;;  %s6204_s30 = sld [smem:[#allocation10_spill]]  ;;  %s6205_s25 = sld [smem:[#allocation8_spill]] }
 0x8b0   : > { %s6206_s6 = sld [smem:[#allocation11_spill]]  ;;  %s6207_s29 = smov %s5038_s2 }
 0x8b5   : > { %p35_p3 = scmp.ge.s32.totalorder %s6204_s30, 4   ;;  %s6208_s2 = smov %s6205_s25 }
 0x8b7   :  { %37 = sbr.rel (!%p35_p3) target bundleno = 15 (0xf), region = 175 }
 0x8be   :  { %3900 = vsyncpa [#allocation5], 1 }
 0x8bf   :  { %3902 = vsyncpa [#allocation5 + $0x1], 1 }

</bundles_post_ra>
